<compile_context>
chip_gen: v7x
topology: tpu7x:2x2x1
jax: 0.10.0
libtpu: 0.0.40
codegen_flags: <defaults>
</compile_context>

<pallas_src>
import jax
import jax.numpy as jnp
import numpy as np
from jax.experimental import pallas as pl
from jax.experimental.pallas import tpu as pltpu


# ----------------------------------------------------------------------------
# Fused kernel: per grid step = (input projection for the chunk) + Tc GRU steps
# + Linear head + softmax.  PyTorch gate equations (gate order [r, z, n]):
#   r = sigmoid(gi_r + W_hr h)                # b_ir + b_hr folded into gi_r
#   z = sigmoid(gi_z + W_hz h)                # b_iz + b_hz folded into gi_z
#   n = tanh   (gi_n + r * (W_hn h + b_hn))   # gi_n carries b_in only
#   h = (1 - z) * n + z * h
# ----------------------------------------------------------------------------
def gru_head_kernel(h0_ref, x_ref, w_ih_ref, b_gates_ref, w_hh_ref, b_hn_ref,
                    w_out_ref, b_out_ref,
                    probs_ref, values_ref, hn_ref,
                    h_carry, h_chunk, gi_buf):
    c = pl.program_id(1)                         # time-chunk index (serial axis)
    Bb, Tc, Hp = h_chunk.shape
    I = x_ref.shape[-1]
    O = w_out_ref.shape[1]

    @pl.when(c == 0)
    def _():
        h_carry[...] = h0_ref[...]

    # Per-chunk input projection: one fully parallel (Bb*Tc, I) @ (I, 3Hp) matmul,
    # off the serial per-step critical path.  Result parked in VMEM scratch so the
    # unrolled loop only reads small lane-aligned slices (no register spills).
    x_c = x_ref[...].astype(jnp.float32)
    gi = jnp.dot(x_c.reshape(Bb * Tc, I), w_ih_ref[...],
                 preferred_element_type=jnp.float32) + b_gates_ref[...]
    gi_buf[...] = gi.reshape(Bb, Tc, 3 * Hp)

    # Hoist the b_hn broadcast out of the unrolled step loop (JAX does not CSE it).
    b_hn = jnp.broadcast_to(b_hn_ref[...], (Bb, Hp))

    h = h_carry[...]                             # (Bb, Hp) carried hidden state
    # Fully unrolled inner loop (Tc is small & static): every index is static and
    # all gate slices land on 128-lane boundaries (offsets 0, Hp, 2Hp).
    for s in range(Tc):
        gi_s = gi_buf[:, s, :]                                     # (Bb, 3Hp)
        gh = jnp.dot(h, w_hh_ref[...],                             # RHS streamed from VMEM
                     preferred_element_type=jnp.float32)           # (Bb, 3Hp)
        r = jax.nn.sigmoid(gi_s[:, 0:Hp] + gh[:, 0:Hp])
        z = jax.nn.sigmoid(gi_s[:, Hp:2 * Hp] + gh[:, Hp:2 * Hp])
        n = jnp.tanh(gi_s[:, 2 * Hp:] + r * (gh[:, 2 * Hp:] + b_hn))
        h = (1.0 - z) * n + z * h
        h_chunk[:, s, :] = h                                       # stays in VMEM
    h_carry[...] = h

    # Fused head over the whole chunk: one (Bb*Tc, Hp) @ (Hp, O) matmul + softmax.
    hs = h_chunk[...].reshape(Bb * Tc, Hp)
    v = jnp.dot(hs, w_out_ref[...], preferred_element_type=jnp.float32) + b_out_ref[...]
    v = v.reshape(Bb, Tc, O)
    values_ref[...] = v.astype(values_ref.dtype)
    m = jnp.max(v, axis=-1, keepdims=True)
    e = jnp.exp(v - m)
    inv = pl.reciprocal(jnp.sum(e, axis=-1, keepdims=True), approx=False)
    probs_ref[...] = (e * inv).astype(probs_ref.dtype)

    @pl.when(c == pl.num_programs(1) - 1)
    def _():
        hn_ref[...] = h.astype(hn_ref.dtype)


def _round_up(x, m):
    return ((x + m - 1) // m) * m


def _pick_time_chunk(T, Bb, I, Hp, O, max_chunk=64, vmem_budget=12 << 20):
    """Largest legal time chunk: Tc | T, layout-legal (Tc % 8 == 0 or Tc == T),
    fits the VMEM budget (incl. double-buffered pipelined blocks + scratch),
    preferring Bb*Tc a multiple of 128 (full MXU rows for the head matmul)."""
    def chunk_bytes(tc):
        # 2x-buffered x input, 2x-buffered probs+values outputs, gi + h_chunk scratch
        return 4 * Bb * tc * (2 * I + 4 * O + 3 * Hp + Hp)

    best, best_score = None, None
    for tc in range(1, min(T, max_chunk) + 1):
        if T % tc != 0 or not (tc % 8 == 0 or tc == T):
            continue
        if chunk_bytes(tc) > vmem_budget:
            continue
        score = ((Bb * tc) % 128 == 0, tc)
        if best_score is None or score > best_score:
            best, best_score = tc, score
    # Tc == T is always layout-legal; used only if no chunk fits the constraints.
    return best if best is not None else T


# ----------------------------------------------------------------------------
# Wrapper
# ----------------------------------------------------------------------------
@jax.jit
def evid_gru_forward(x, w_ih, w_hh, b_ih, b_hh, w_out, b_out, h0):
    """x: (B, T, I) float32.  Returns (softmax_output, values, hn) matching the
    PyTorch module: shapes (B, T, O), (B, T, O), (1, B, H)."""
    B, T, I = x.shape
    H = w_hh.shape[1]                    # w_hh is (3H, H)
    O = w_out.shape[0]
    Hp = _round_up(H, 128)               # per-gate lane padding -> aligned gate slices
    f32 = jnp.float32
    x = x.astype(f32)

    # Per-gate padded parameter layout: gate g occupies columns [g*Hp, g*Hp + H).
    # Padded rows/cols are zero, so padded hidden lanes stay exactly zero.
    b_fold = b_ih + jnp.concatenate([b_hh[:2 * H], jnp.zeros((H,), b_hh.dtype)])
    w_ih_t = jnp.zeros((I, 3 * Hp), f32)
    w_hh_t = jnp.zeros((Hp, 3 * Hp), f32)
    b_gates = jnp.zeros((1, 3 * Hp), f32)
    for g in range(3):
        w_ih_t = w_ih_t.at[:, g * Hp:g * Hp + H].set(w_ih.T[:, g * H:(g + 1) * H].astype(f32))
        w_hh_t = w_hh_t.at[:H, g * Hp:g * Hp + H].set(w_hh.T[:, g * H:(g + 1) * H].astype(f32))
        b_gates = b_gates.at[0, g * Hp:g * Hp + H].set(b_fold[g * H:(g + 1) * H].astype(f32))
    b_hn_2d = jnp.zeros((1, Hp), f32).at[0, :H].set(b_hh[2 * H:].astype(f32))
    w_out_t = jnp.zeros((Hp, O), f32).at[:H, :].set(w_out.T.astype(f32))
    b_out_2d = b_out.reshape(1, O).astype(f32)
    h0_p = jnp.zeros((B, Hp), f32).at[:, :H].set(h0[0].astype(f32))

    # Batch blocking: shard batch across TensorCores on v7x megacore when legal
    # (block second-to-last dim must be a multiple of 8 or the full dim).
    Bb = 8 if (B % 8 == 0 and B > 8) else B
    Tc = _pick_time_chunk(T, Bb, I, Hp, O)

    probs, values, hn = pl.pallas_call(
        gru_head_kernel,
        out_shape=(jax.ShapeDtypeStruct((B, T, O), f32),
                   jax.ShapeDtypeStruct((B, T, O), f32),
                   jax.ShapeDtypeStruct((B, Hp), f32)),
        grid_spec=pltpu.PrefetchScalarGridSpec(
            num_scalar_prefetch=0,
            grid=(B // Bb, T // Tc),
            in_specs=[
                pl.BlockSpec((Bb, Hp), lambda b, c: (b, 0)),            # h0
                pl.BlockSpec((Bb, Tc, I), lambda b, c: (b, c, 0)),      # x chunk
                pl.BlockSpec((I, 3 * Hp), lambda b, c: (0, 0)),         # W_ih^T (padded)
                pl.BlockSpec((1, 3 * Hp), lambda b, c: (0, 0)),         # folded gate bias
                pl.BlockSpec((Hp, 3 * Hp), lambda b, c: (0, 0)),        # W_hh^T (padded)
                pl.BlockSpec((1, Hp), lambda b, c: (0, 0)),             # b_hn
                pl.BlockSpec((Hp, O), lambda b, c: (0, 0)),             # W_out^T
                pl.BlockSpec((1, O), lambda b, c: (0, 0)),              # b_out
            ],
            out_specs=[
                pl.BlockSpec((Bb, Tc, O), lambda b, c: (b, c, 0)),      # probs
                pl.BlockSpec((Bb, Tc, O), lambda b, c: (b, c, 0)),      # values
                pl.BlockSpec((Bb, Hp), lambda b, c: (b, 0)),            # hn
            ],
            scratch_shapes=[pltpu.VMEM((Bb, Hp), f32),                  # h carry
                            pltpu.VMEM((Bb, Tc, Hp), f32),              # per-chunk hidden
                            pltpu.VMEM((Bb, Tc, 3 * Hp), f32)],         # per-chunk gi
        ),
        compiler_params=pltpu.CompilerParams(
            dimension_semantics=("parallel", "arbitrary"),   # batch parallel, time serial
            vmem_limit_bytes=32 * 1024 * 1024),
    )(h0_p, x, w_ih_t, b_gates, w_hh_t, b_hn_2d, w_out_t, b_out_2d)

    return probs, values, hn[:, :H].reshape(1, B, H)


# ----------------------------------------------------------------------------
# Pure-JAX reference (for correctness check)
# ----------------------------------------------------------------------------
def ref_forward(x, w_ih, w_hh, b_ih, b_hh, w_out, b_out, h0):
    B, T, I = x.shape
    H = w_hh.shape[1]

    def step(h, x_t):
        gi = x_t @ w_ih.T + b_ih
        gh = h @ w_hh.T + b_hh
        r = jax.nn.sigmoid(gi[:, :H] + gh[:, :H])
        z = jax.nn.sigmoid(gi[:, H:2 * H] + gh[:, H:2 * H])
        n = jnp.tanh(gi[:, 2 * H:] + r * gh[:, 2 * H:])
        h_new = (1.0 - z) * n + z * h
        return h_new, h_new

    hn, outs = jax.lax.scan(step, h0[0], jnp.transpose(x, (1, 0, 2)))
    gru_out = jnp.transpose(outs, (1, 0, 2))
    values = gru_out @ w_out.T + b_out
    probs = jax.nn.softmax(values, axis=-1)
    return probs, values, hn.reshape(1, B, H)


if __name__ == "__main__":
    # Small shapes consistent with the module's forward.
    B, T, I, H, O = 2, 8, 16, 32, 10

    key = jax.random.PRNGKey(0)
    kx, kw1, kw2, kb1, kb2, kw3, kb3 = jax.random.split(key, 7)

    # Deterministic PyTorch-style init: U(-1/sqrt(H), 1/sqrt(H)).
    s = 1.0 / np.sqrt(H)
    x = jax.random.normal(kx, (B, T, I), dtype=jnp.float32)
    w_ih = jax.random.uniform(kw1, (3 * H, I), jnp.float32, -s, s)
    w_hh = jax.random.uniform(kw2, (3 * H, H), jnp.float32, -s, s)
    b_ih = jax.random.uniform(kb1, (3 * H,), jnp.float32, -s, s)
    b_hh = jax.random.uniform(kb2, (3 * H,), jnp.float32, -s, s)
    w_out = jax.random.uniform(kw3, (O, H), jnp.float32, -s, s)
    b_out = jax.random.uniform(kb3, (O,), jnp.float32, -s, s)
    h0 = jnp.zeros((1, B, H), jnp.float32)

    probs, values, hn = evid_gru_forward(x, w_ih, w_hh, b_ih, b_hh, w_out, b_out, h0)
    jax.block_until_ready((probs, values, hn))

    p_ref, v_ref, hn_r = ref_forward(x, w_ih, w_hh, b_ih, b_hh, w_out, b_out, h0)
    np.testing.assert_allclose(np.asarray(values), np.asarray(v_ref), rtol=1e-5, atol=1e-5)
    np.testing.assert_allclose(np.asarray(probs), np.asarray(p_ref), rtol=1e-5, atol=1e-5)
    np.testing.assert_allclose(np.asarray(hn), np.asarray(hn_r), rtol=1e-5, atol=1e-5)

    assert probs.shape == (B, T, O) and values.shape == (B, T, O) and hn.shape == (1, B, H)
    print("KERNEL_OK")
</pallas_src>

<mosaic_0001>
module attributes {stable_mosaic.version = 11 : i64} {
  func.func @gru_head_kernel(%arg0: i32, %arg1: i32, %arg2: memref<2x128xf32, #tpu.memory_space<vmem>>, %arg3: memref<2x8x16xf32, #tpu.memory_space<vmem>>, %arg4: memref<16x384xf32, #tpu.memory_space<vmem>>, %arg5: memref<1x384xf32, #tpu.memory_space<vmem>>, %arg6: memref<128x384xf32, #tpu.memory_space<vmem>>, %arg7: memref<1x128xf32, #tpu.memory_space<vmem>>, %arg8: memref<128x10xf32, #tpu.memory_space<vmem>>, %arg9: memref<1x10xf32, #tpu.memory_space<vmem>>, %arg10: memref<2x8x10xf32, #tpu.memory_space<vmem>>, %arg11: memref<2x8x10xf32, #tpu.memory_space<vmem>>, %arg12: memref<2x128xf32, #tpu.memory_space<vmem>>, %arg13: memref<2x128xf32, #tpu.memory_space<vmem>>, %arg14: memref<2x8x128xf32, #tpu.memory_space<vmem>>, %arg15: memref<2x8x384xf32, #tpu.memory_space<vmem>>) attributes {dimension_semantics = [#tpu.dimension_semantics<parallel>, #tpu.dimension_semantics<arbitrary>], iteration_bounds = array<i64: 1, 1>, scalar_prefetch = 0 : i64, scratch_operands = 3 : i64, tpu.core_type = #tpu.core_type<tc>, window_params = [{transform_indices = @transform_0, window_bounds = array<i64: 2, 128>}, {transform_indices = @transform_1, window_bounds = array<i64: 2, 8, 16>}, {pipeline_mode = #tpu.pipeline_mode<synchronous>, transform_indices = @transform_2, window_bounds = array<i64: 16, 384>}, {pipeline_mode = #tpu.pipeline_mode<synchronous>, transform_indices = @transform_3, window_bounds = array<i64: 1, 384>}, {pipeline_mode = #tpu.pipeline_mode<synchronous>, transform_indices = @transform_4, window_bounds = array<i64: 128, 384>}, {pipeline_mode = #tpu.pipeline_mode<synchronous>, transform_indices = @transform_5, window_bounds = array<i64: 1, 128>}, {pipeline_mode = #tpu.pipeline_mode<synchronous>, transform_indices = @transform_6, window_bounds = array<i64: 128, 10>}, {pipeline_mode = #tpu.pipeline_mode<synchronous>, transform_indices = @transform_7, window_bounds = array<i64: 1, 10>}, {transform_indices = @transform_8, window_bounds = array<i64: 2, 8, 10>}, {transform_indices = @transform_9, window_bounds = array<i64: 2, 8, 10>}, {transform_indices = @transform_10, window_bounds = array<i64: 2, 128>}]} {
    %c0_i32 = arith.constant 0 : i32
    %0 = arith.cmpi eq, %arg1, %c0_i32 : i32
    %1 = arith.extui %0 : i1 to i32
    %c0_i32_0 = arith.constant 0 : i32
    %2 = arith.cmpi ne, %1, %c0_i32_0 : i32
    scf.if %2 {
      %c0_123 = arith.constant 0 : index
      %c0_124 = arith.constant 0 : index
      %312 = vector.load %arg2[%c0_123, %c0_124] : memref<2x128xf32, #tpu.memory_space<vmem>>, vector<2x128xf32>
      %c0_125 = arith.constant 0 : index
      %c0_126 = arith.constant 0 : index
      %313 = vector.load %arg13[%c0_125, %c0_126] : memref<2x128xf32, #tpu.memory_space<vmem>>, vector<2x128xf32>
      tpu.vector_store %arg13[%c0_125, %c0_126], %312 {strides = array<i32>} : memref<2x128xf32, #tpu.memory_space<vmem>>, vector<2x128xf32>,
    } else {
    }
    %c0 = arith.constant 0 : index
    %c0_1 = arith.constant 0 : index
    %c0_2 = arith.constant 0 : index
    %3 = vector.load %arg3[%c0, %c0_1, %c0_2] : memref<2x8x16xf32, #tpu.memory_space<vmem>>, vector<2x8x16xf32>
    %4 = vector.shape_cast %3 : vector<2x8x16xf32> to vector<16x16xf32>
    %c0_3 = arith.constant 0 : index
    %c0_4 = arith.constant 0 : index
    %5 = vector.load %arg4[%c0_3, %c0_4] : memref<16x384xf32, #tpu.memory_space<vmem>>, vector<16x384xf32>
    %cst = arith.constant dense<0.000000e+00> : vector<16x384xf32>
    %6 = tpu.matmul %4, %5, %cst {dimension_numbers = #tpu.dot_dimension_numbers<[1], [0], [0], [1], [0, 0, 1, 1], [], []>} : vector<16x16xf32>, vector<16x384xf32>, vector<16x384xf32> -> vector<16x384xf32>
    %c0_5 = arith.constant 0 : index
    %c0_6 = arith.constant 0 : index
    %7 = vector.load %arg5[%c0_5, %c0_6] : memref<1x384xf32, #tpu.memory_space<vmem>>, vector<1x384xf32>
    %8 = vector.broadcast %7 : vector<1x384xf32> to vector<16x384xf32>
    %9 = arith.addf %6, %8 : vector<16x384xf32>
    %10 = vector.shape_cast %9 : vector<16x384xf32> to vector<2x8x384xf32>
    %c0_7 = arith.constant 0 : index
    %c0_8 = arith.constant 0 : index
    %c0_9 = arith.constant 0 : index
    %11 = vector.load %arg15[%c0_7, %c0_8, %c0_9] : memref<2x8x384xf32, #tpu.memory_space<vmem>>, vector<2x8x384xf32>
    tpu.vector_store %arg15[%c0_7, %c0_8, %c0_9], %10 {strides = array<i32>} : memref<2x8x384xf32, #tpu.memory_space<vmem>>, vector<2x8x384xf32>,
    %c0_10 = arith.constant 0 : index
    %c0_11 = arith.constant 0 : index
    %12 = vector.load %arg7[%c0_10, %c0_11] : memref<1x128xf32, #tpu.memory_space<vmem>>, vector<1x128xf32>
    %13 = vector.shape_cast %12 : vector<1x128xf32> to vector<1x128xf32>
    %14 = vector.broadcast %13 : vector<1x128xf32> to vector<2x128xf32>
    %c0_12 = arith.constant 0 : index
    %c0_13 = arith.constant 0 : index
    %15 = vector.load %arg13[%c0_12, %c0_13] : memref<2x128xf32, #tpu.memory_space<vmem>>, vector<2x128xf32>
    %c0_14 = arith.constant 0 : index
    %c0_15 = arith.constant 0 : index
    %c0_16 = arith.constant 0 : index
    %16 = vector.load %arg15[%c0_14, %c0_15, %c0_16] : memref<2x8x384xf32, #tpu.memory_space<vmem>>, vector<2x1x384xf32>
    %17 = vector.shape_cast %16 : vector<2x1x384xf32> to vector<2x384xf32>
    %c0_17 = arith.constant 0 : index
    %c0_18 = arith.constant 0 : index
    %18 = vector.load %arg6[%c0_17, %c0_18] : memref<128x384xf32, #tpu.memory_space<vmem>>, vector<128x384xf32>
    %cst_19 = arith.constant dense<0.000000e+00> : vector<2x384xf32>
    %19 = tpu.matmul %15, %18, %cst_19 {dimension_numbers = #tpu.dot_dimension_numbers<[1], [0], [0], [1], [0, 0, 1, 1], [], []>} : vector<2x128xf32>, vector<128x384xf32>, vector<2x384xf32> -> vector<2x384xf32>
    %20 = vector.extract_strided_slice %17 {offsets = [0, 0], sizes = [2, 128], strides = [1, 1]} : vector<2x384xf32> to vector<2x128xf32>
    %21 = vector.extract_strided_slice %19 {offsets = [0, 0], sizes = [2, 128], strides = [1, 1]} : vector<2x384xf32> to vector<2x128xf32>
    %22 = arith.addf %20, %21 : vector<2x128xf32>
    %23 = arith.negf %22 : vector<2x128xf32>
    %24 = math.exp %23 : vector<2x128xf32>
    %cst_20 = arith.constant 1.000000e+00 : f32
    %25 = vector.broadcast %cst_20 : f32 to vector<2x128xf32>
    %26 = arith.addf %25, %24 : vector<2x128xf32>
    %27 = arith.divf %25, %26 : vector<2x128xf32>
    %28 = vector.extract_strided_slice %17 {offsets = [0, 128], sizes = [2, 128], strides = [1, 1]} : vector<2x384xf32> to vector<2x128xf32>
    %29 = vector.extract_strided_slice %19 {offsets = [0, 128], sizes = [2, 128], strides = [1, 1]} : vector<2x384xf32> to vector<2x128xf32>
    %30 = arith.addf %28, %29 : vector<2x128xf32>
    %31 = arith.negf %30 : vector<2x128xf32>
    %32 = math.exp %31 : vector<2x128xf32>
    %cst_21 = arith.constant 1.000000e+00 : f32
    %33 = vector.broadcast %cst_21 : f32 to vector<2x128xf32>
    %34 = arith.addf %33, %32 : vector<2x128xf32>
    %35 = arith.divf %33, %34 : vector<2x128xf32>
    %36 = vector.extract_strided_slice %17 {offsets = [0, 256], sizes = [2, 128], strides = [1, 1]} : vector<2x384xf32> to vector<2x128xf32>
    %37 = vector.extract_strided_slice %19 {offsets = [0, 256], sizes = [2, 128], strides = [1, 1]} : vector<2x384xf32> to vector<2x128xf32>
    %38 = arith.addf %37, %14 : vector<2x128xf32>
    %39 = arith.mulf %27, %38 : vector<2x128xf32>
    %40 = arith.addf %36, %39 : vector<2x128xf32>
    %41 = math.tanh %40 : vector<2x128xf32>
    %cst_22 = arith.constant 1.000000e+00 : f32
    %42 = vector.broadcast %cst_22 : f32 to vector<2x128xf32>
    %43 = arith.subf %42, %35 : vector<2x128xf32>
    %44 = arith.mulf %43, %41 : vector<2x128xf32>
    %45 = arith.mulf %35, %15 : vector<2x128xf32>
    %46 = arith.addf %44, %45 : vector<2x128xf32>
    %c0_23 = arith.constant 0 : index
    %c0_24 = arith.constant 0 : index
    %c0_25 = arith.constant 0 : index
    %47 = vector.load %arg14[%c0_23, %c0_24, %c0_25] : memref<2x8x128xf32, #tpu.memory_space<vmem>>, vector<2x1x128xf32>
    %48 = vector.shape_cast %47 : vector<2x1x128xf32> to vector<2x128xf32>
    %49 = vector.shape_cast %46 : vector<2x128xf32> to vector<2x1x128xf32>
    tpu.vector_store %arg14[%c0_23, %c0_24, %c0_25], %49 {strides = array<i32>} : memref<2x8x128xf32, #tpu.memory_space<vmem>>, vector<2x1x128xf32>,
    %c0_26 = arith.constant 0 : index
    %c1 = arith.constant 1 : index
    %c0_27 = arith.constant 0 : index
    %50 = vector.load %arg15[%c0_26, %c1, %c0_27] : memref<2x8x384xf32, #tpu.memory_space<vmem>>, vector<2x1x384xf32>
    %51 = vector.shape_cast %50 : vector<2x1x384xf32> to vector<2x384xf32>
    %c0_28 = arith.constant 0 : index
    %c0_29 = arith.constant 0 : index
    %52 = vector.load %arg6[%c0_28, %c0_29] : memref<128x384xf32, #tpu.memory_space<vmem>>, vector<128x384xf32>
    %cst_30 = arith.constant dense<0.000000e+00> : vector<2x384xf32>
    %53 = tpu.matmul %46, %52, %cst_30 {dimension_numbers = #tpu.dot_dimension_numbers<[1], [0], [0], [1], [0, 0, 1, 1], [], []>} : vector<2x128xf32>, vector<128x384xf32>, vector<2x384xf32> -> vector<2x384xf32>
    %54 = vector.extract_strided_slice %51 {offsets = [0, 0], sizes = [2, 128], strides = [1, 1]} : vector<2x384xf32> to vector<2x128xf32>
    %55 = vector.extract_strided_slice %53 {offsets = [0, 0], sizes = [2, 128], strides = [1, 1]} : vector<2x384xf32> to vector<2x128xf32>
    %56 = arith.addf %54, %55 : vector<2x128xf32>
    %57 = arith.negf %56 : vector<2x128xf32>
    %58 = math.exp %57 : vector<2x128xf32>
    %cst_31 = arith.constant 1.000000e+00 : f32
    %59 = vector.broadcast %cst_31 : f32 to vector<2x128xf32>
    %60 = arith.addf %59, %58 : vector<2x128xf32>
    %61 = arith.divf %59, %60 : vector<2x128xf32>
    %62 = vector.extract_strided_slice %51 {offsets = [0, 128], sizes = [2, 128], strides = [1, 1]} : vector<2x384xf32> to vector<2x128xf32>
    %63 = vector.extract_strided_slice %53 {offsets = [0, 128], sizes = [2, 128], strides = [1, 1]} : vector<2x384xf32> to vector<2x128xf32>
    %64 = arith.addf %62, %63 : vector<2x128xf32>
    %65 = arith.negf %64 : vector<2x128xf32>
    %66 = math.exp %65 : vector<2x128xf32>
    %cst_32 = arith.constant 1.000000e+00 : f32
    %67 = vector.broadcast %cst_32 : f32 to vector<2x128xf32>
    %68 = arith.addf %67, %66 : vector<2x128xf32>
    %69 = arith.divf %67, %68 : vector<2x128xf32>
    %70 = vector.extract_strided_slice %51 {offsets = [0, 256], sizes = [2, 128], strides = [1, 1]} : vector<2x384xf32> to vector<2x128xf32>
    %71 = vector.extract_strided_slice %53 {offsets = [0, 256], sizes = [2, 128], strides = [1, 1]} : vector<2x384xf32> to vector<2x128xf32>
    %72 = arith.addf %71, %14 : vector<2x128xf32>
    %73 = arith.mulf %61, %72 : vector<2x128xf32>
    %74 = arith.addf %70, %73 : vector<2x128xf32>
    %75 = math.tanh %74 : vector<2x128xf32>
    %cst_33 = arith.constant 1.000000e+00 : f32
    %76 = vector.broadcast %cst_33 : f32 to vector<2x128xf32>
    %77 = arith.subf %76, %69 : vector<2x128xf32>
    %78 = arith.mulf %77, %75 : vector<2x128xf32>
    %79 = arith.mulf %69, %46 : vector<2x128xf32>
    %80 = arith.addf %78, %79 : vector<2x128xf32>
    %c0_34 = arith.constant 0 : index
    %c1_35 = arith.constant 1 : index
    %c0_36 = arith.constant 0 : index
    %81 = vector.load %arg14[%c0_34, %c1_35, %c0_36] : memref<2x8x128xf32, #tpu.memory_space<vmem>>, vector<2x1x128xf32>
    %82 = vector.shape_cast %81 : vector<2x1x128xf32> to vector<2x128xf32>
    %83 = vector.shape_cast %80 : vector<2x128xf32> to vector<2x1x128xf32>
    tpu.vector_store %arg14[%c0_34, %c1_35, %c0_36], %83 {strides = array<i32>} : memref<2x8x128xf32, #tpu.memory_space<vmem>>, vector<2x1x128xf32>,
    %c0_37 = arith.constant 0 : index
    %c2 = arith.constant 2 : index
    %c0_38 = arith.constant 0 : index
    %84 = vector.load %arg15[%c0_37, %c2, %c0_38] : memref<2x8x384xf32, #tpu.memory_space<vmem>>, vector<2x1x384xf32>
    %85 = vector.shape_cast %84 : vector<2x1x384xf32> to vector<2x384xf32>
    %c0_39 = arith.constant 0 : index
    %c0_40 = arith.constant 0 : index
    %86 = vector.load %arg6[%c0_39, %c0_40] : memref<128x384xf32, #tpu.memory_space<vmem>>, vector<128x384xf32>
    %cst_41 = arith.constant dense<0.000000e+00> : vector<2x384xf32>
    %87 = tpu.matmul %80, %86, %cst_41 {dimension_numbers = #tpu.dot_dimension_numbers<[1], [0], [0], [1], [0, 0, 1, 1], [], []>} : vector<2x128xf32>, vector<128x384xf32>, vector<2x384xf32> -> vector<2x384xf32>
    %88 = vector.extract_strided_slice %85 {offsets = [0, 0], sizes = [2, 128], strides = [1, 1]} : vector<2x384xf32> to vector<2x128xf32>
    %89 = vector.extract_strided_slice %87 {offsets = [0, 0], sizes = [2, 128], strides = [1, 1]} : vector<2x384xf32> to vector<2x128xf32>
    %90 = arith.addf %88, %89 : vector<2x128xf32>
    %91 = arith.negf %90 : vector<2x128xf32>
    %92 = math.exp %91 : vector<2x128xf32>
    %cst_42 = arith.constant 1.000000e+00 : f32
    %93 = vector.broadcast %cst_42 : f32 to vector<2x128xf32>
    %94 = arith.addf %93, %92 : vector<2x128xf32>
    %95 = arith.divf %93, %94 : vector<2x128xf32>
    %96 = vector.extract_strided_slice %85 {offsets = [0, 128], sizes = [2, 128], strides = [1, 1]} : vector<2x384xf32> to vector<2x128xf32>
    %97 = vector.extract_strided_slice %87 {offsets = [0, 128], sizes = [2, 128], strides = [1, 1]} : vector<2x384xf32> to vector<2x128xf32>
    %98 = arith.addf %96, %97 : vector<2x128xf32>
    %99 = arith.negf %98 : vector<2x128xf32>
    %100 = math.exp %99 : vector<2x128xf32>
    %cst_43 = arith.constant 1.000000e+00 : f32
    %101 = vector.broadcast %cst_43 : f32 to vector<2x128xf32>
    %102 = arith.addf %101, %100 : vector<2x128xf32>
    %103 = arith.divf %101, %102 : vector<2x128xf32>
    %104 = vector.extract_strided_slice %85 {offsets = [0, 256], sizes = [2, 128], strides = [1, 1]} : vector<2x384xf32> to vector<2x128xf32>
    %105 = vector.extract_strided_slice %87 {offsets = [0, 256], sizes = [2, 128], strides = [1, 1]} : vector<2x384xf32> to vector<2x128xf32>
    %106 = arith.addf %105, %14 : vector<2x128xf32>
    %107 = arith.mulf %95, %106 : vector<2x128xf32>
    %108 = arith.addf %104, %107 : vector<2x128xf32>
    %109 = math.tanh %108 : vector<2x128xf32>
    %cst_44 = arith.constant 1.000000e+00 : f32
    %110 = vector.broadcast %cst_44 : f32 to vector<2x128xf32>
    %111 = arith.subf %110, %103 : vector<2x128xf32>
    %112 = arith.mulf %111, %109 : vector<2x128xf32>
    %113 = arith.mulf %103, %80 : vector<2x128xf32>
    %114 = arith.addf %112, %113 : vector<2x128xf32>
    %c0_45 = arith.constant 0 : index
    %c2_46 = arith.constant 2 : index
    %c0_47 = arith.constant 0 : index
    %115 = vector.load %arg14[%c0_45, %c2_46, %c0_47] : memref<2x8x128xf32, #tpu.memory_space<vmem>>, vector<2x1x128xf32>
    %116 = vector.shape_cast %115 : vector<2x1x128xf32> to vector<2x128xf32>
    %117 = vector.shape_cast %114 : vector<2x128xf32> to vector<2x1x128xf32>
    tpu.vector_store %arg14[%c0_45, %c2_46, %c0_47], %117 {strides = array<i32>} : memref<2x8x128xf32, #tpu.memory_space<vmem>>, vector<2x1x128xf32>,
    %c0_48 = arith.constant 0 : index
    %c3 = arith.constant 3 : index
    %c0_49 = arith.constant 0 : index
    %118 = vector.load %arg15[%c0_48, %c3, %c0_49] : memref<2x8x384xf32, #tpu.memory_space<vmem>>, vector<2x1x384xf32>
    %119 = vector.shape_cast %118 : vector<2x1x384xf32> to vector<2x384xf32>
    %c0_50 = arith.constant 0 : index
    %c0_51 = arith.constant 0 : index
    %120 = vector.load %arg6[%c0_50, %c0_51] : memref<128x384xf32, #tpu.memory_space<vmem>>, vector<128x384xf32>
    %cst_52 = arith.constant dense<0.000000e+00> : vector<2x384xf32>
    %121 = tpu.matmul %114, %120, %cst_52 {dimension_numbers = #tpu.dot_dimension_numbers<[1], [0], [0], [1], [0, 0, 1, 1], [], []>} : vector<2x128xf32>, vector<128x384xf32>, vector<2x384xf32> -> vector<2x384xf32>
    %122 = vector.extract_strided_slice %119 {offsets = [0, 0], sizes = [2, 128], strides = [1, 1]} : vector<2x384xf32> to vector<2x128xf32>
    %123 = vector.extract_strided_slice %121 {offsets = [0, 0], sizes = [2, 128], strides = [1, 1]} : vector<2x384xf32> to vector<2x128xf32>
    %124 = arith.addf %122, %123 : vector<2x128xf32>
    %125 = arith.negf %124 : vector<2x128xf32>
    %126 = math.exp %125 : vector<2x128xf32>
    %cst_53 = arith.constant 1.000000e+00 : f32
    %127 = vector.broadcast %cst_53 : f32 to vector<2x128xf32>
    %128 = arith.addf %127, %126 : vector<2x128xf32>
    %129 = arith.divf %127, %128 : vector<2x128xf32>
    %130 = vector.extract_strided_slice %119 {offsets = [0, 128], sizes = [2, 128], strides = [1, 1]} : vector<2x384xf32> to vector<2x128xf32>
    %131 = vector.extract_strided_slice %121 {offsets = [0, 128], sizes = [2, 128], strides = [1, 1]} : vector<2x384xf32> to vector<2x128xf32>
    %132 = arith.addf %130, %131 : vector<2x128xf32>
    %133 = arith.negf %132 : vector<2x128xf32>
    %134 = math.exp %133 : vector<2x128xf32>
    %cst_54 = arith.constant 1.000000e+00 : f32
    %135 = vector.broadcast %cst_54 : f32 to vector<2x128xf32>
    %136 = arith.addf %135, %134 : vector<2x128xf32>
    %137 = arith.divf %135, %136 : vector<2x128xf32>
    %138 = vector.extract_strided_slice %119 {offsets = [0, 256], sizes = [2, 128], strides = [1, 1]} : vector<2x384xf32> to vector<2x128xf32>
    %139 = vector.extract_strided_slice %121 {offsets = [0, 256], sizes = [2, 128], strides = [1, 1]} : vector<2x384xf32> to vector<2x128xf32>
    %140 = arith.addf %139, %14 : vector<2x128xf32>
    %141 = arith.mulf %129, %140 : vector<2x128xf32>
    %142 = arith.addf %138, %141 : vector<2x128xf32>
    %143 = math.tanh %142 : vector<2x128xf32>
    %cst_55 = arith.constant 1.000000e+00 : f32
    %144 = vector.broadcast %cst_55 : f32 to vector<2x128xf32>
    %145 = arith.subf %144, %137 : vector<2x128xf32>
    %146 = arith.mulf %145, %143 : vector<2x128xf32>
    %147 = arith.mulf %137, %114 : vector<2x128xf32>
    %148 = arith.addf %146, %147 : vector<2x128xf32>
    %c0_56 = arith.constant 0 : index
    %c3_57 = arith.constant 3 : index
    %c0_58 = arith.constant 0 : index
    %149 = vector.load %arg14[%c0_56, %c3_57, %c0_58] : memref<2x8x128xf32, #tpu.memory_space<vmem>>, vector<2x1x128xf32>
    %150 = vector.shape_cast %149 : vector<2x1x128xf32> to vector<2x128xf32>
    %151 = vector.shape_cast %148 : vector<2x128xf32> to vector<2x1x128xf32>
    tpu.vector_store %arg14[%c0_56, %c3_57, %c0_58], %151 {strides = array<i32>} : memref<2x8x128xf32, #tpu.memory_space<vmem>>, vector<2x1x128xf32>,
    %c0_59 = arith.constant 0 : index
    %c4 = arith.constant 4 : index
    %c0_60 = arith.constant 0 : index
    %152 = vector.load %arg15[%c0_59, %c4, %c0_60] : memref<2x8x384xf32, #tpu.memory_space<vmem>>, vector<2x1x384xf32>
    %153 = vector.shape_cast %152 : vector<2x1x384xf32> to vector<2x384xf32>
    %c0_61 = arith.constant 0 : index
    %c0_62 = arith.constant 0 : index
    %154 = vector.load %arg6[%c0_61, %c0_62] : memref<128x384xf32, #tpu.memory_space<vmem>>, vector<128x384xf32>
    %cst_63 = arith.constant dense<0.000000e+00> : vector<2x384xf32>
    %155 = tpu.matmul %148, %154, %cst_63 {dimension_numbers = #tpu.dot_dimension_numbers<[1], [0], [0], [1], [0, 0, 1, 1], [], []>} : vector<2x128xf32>, vector<128x384xf32>, vector<2x384xf32> -> vector<2x384xf32>
    %156 = vector.extract_strided_slice %153 {offsets = [0, 0], sizes = [2, 128], strides = [1, 1]} : vector<2x384xf32> to vector<2x128xf32>
    %157 = vector.extract_strided_slice %155 {offsets = [0, 0], sizes = [2, 128], strides = [1, 1]} : vector<2x384xf32> to vector<2x128xf32>
    %158 = arith.addf %156, %157 : vector<2x128xf32>
    %159 = arith.negf %158 : vector<2x128xf32>
    %160 = math.exp %159 : vector<2x128xf32>
    %cst_64 = arith.constant 1.000000e+00 : f32
    %161 = vector.broadcast %cst_64 : f32 to vector<2x128xf32>
    %162 = arith.addf %161, %160 : vector<2x128xf32>
    %163 = arith.divf %161, %162 : vector<2x128xf32>
    %164 = vector.extract_strided_slice %153 {offsets = [0, 128], sizes = [2, 128], strides = [1, 1]} : vector<2x384xf32> to vector<2x128xf32>
    %165 = vector.extract_strided_slice %155 {offsets = [0, 128], sizes = [2, 128], strides = [1, 1]} : vector<2x384xf32> to vector<2x128xf32>
    %166 = arith.addf %164, %165 : vector<2x128xf32>
    %167 = arith.negf %166 : vector<2x128xf32>
    %168 = math.exp %167 : vector<2x128xf32>
    %cst_65 = arith.constant 1.000000e+00 : f32
    %169 = vector.broadcast %cst_65 : f32 to vector<2x128xf32>
    %170 = arith.addf %169, %168 : vector<2x128xf32>
    %171 = arith.divf %169, %170 : vector<2x128xf32>
    %172 = vector.extract_strided_slice %153 {offsets = [0, 256], sizes = [2, 128], strides = [1, 1]} : vector<2x384xf32> to vector<2x128xf32>
    %173 = vector.extract_strided_slice %155 {offsets = [0, 256], sizes = [2, 128], strides = [1, 1]} : vector<2x384xf32> to vector<2x128xf32>
    %174 = arith.addf %173, %14 : vector<2x128xf32>
    %175 = arith.mulf %163, %174 : vector<2x128xf32>
    %176 = arith.addf %172, %175 : vector<2x128xf32>
    %177 = math.tanh %176 : vector<2x128xf32>
    %cst_66 = arith.constant 1.000000e+00 : f32
    %178 = vector.broadcast %cst_66 : f32 to vector<2x128xf32>
    %179 = arith.subf %178, %171 : vector<2x128xf32>
    %180 = arith.mulf %179, %177 : vector<2x128xf32>
    %181 = arith.mulf %171, %148 : vector<2x128xf32>
    %182 = arith.addf %180, %181 : vector<2x128xf32>
    %c0_67 = arith.constant 0 : index
    %c4_68 = arith.constant 4 : index
    %c0_69 = arith.constant 0 : index
    %183 = vector.load %arg14[%c0_67, %c4_68, %c0_69] : memref<2x8x128xf32, #tpu.memory_space<vmem>>, vector<2x1x128xf32>
    %184 = vector.shape_cast %183 : vector<2x1x128xf32> to vector<2x128xf32>
    %185 = vector.shape_cast %182 : vector<2x128xf32> to vector<2x1x128xf32>
    tpu.vector_store %arg14[%c0_67, %c4_68, %c0_69], %185 {strides = array<i32>} : memref<2x8x128xf32, #tpu.memory_space<vmem>>, vector<2x1x128xf32>,
    %c0_70 = arith.constant 0 : index
    %c5 = arith.constant 5 : index
    %c0_71 = arith.constant 0 : index
    %186 = vector.load %arg15[%c0_70, %c5, %c0_71] : memref<2x8x384xf32, #tpu.memory_space<vmem>>, vector<2x1x384xf32>
    %187 = vector.shape_cast %186 : vector<2x1x384xf32> to vector<2x384xf32>
    %c0_72 = arith.constant 0 : index
    %c0_73 = arith.constant 0 : index
    %188 = vector.load %arg6[%c0_72, %c0_73] : memref<128x384xf32, #tpu.memory_space<vmem>>, vector<128x384xf32>
    %cst_74 = arith.constant dense<0.000000e+00> : vector<2x384xf32>
    %189 = tpu.matmul %182, %188, %cst_74 {dimension_numbers = #tpu.dot_dimension_numbers<[1], [0], [0], [1], [0, 0, 1, 1], [], []>} : vector<2x128xf32>, vector<128x384xf32>, vector<2x384xf32> -> vector<2x384xf32>
    %190 = vector.extract_strided_slice %187 {offsets = [0, 0], sizes = [2, 128], strides = [1, 1]} : vector<2x384xf32> to vector<2x128xf32>
    %191 = vector.extract_strided_slice %189 {offsets = [0, 0], sizes = [2, 128], strides = [1, 1]} : vector<2x384xf32> to vector<2x128xf32>
    %192 = arith.addf %190, %191 : vector<2x128xf32>
    %193 = arith.negf %192 : vector<2x128xf32>
    %194 = math.exp %193 : vector<2x128xf32>
    %cst_75 = arith.constant 1.000000e+00 : f32
    %195 = vector.broadcast %cst_75 : f32 to vector<2x128xf32>
    %196 = arith.addf %195, %194 : vector<2x128xf32>
    %197 = arith.divf %195, %196 : vector<2x128xf32>
    %198 = vector.extract_strided_slice %187 {offsets = [0, 128], sizes = [2, 128], strides = [1, 1]} : vector<2x384xf32> to vector<2x128xf32>
    %199 = vector.extract_strided_slice %189 {offsets = [0, 128], sizes = [2, 128], strides = [1, 1]} : vector<2x384xf32> to vector<2x128xf32>
    %200 = arith.addf %198, %199 : vector<2x128xf32>
    %201 = arith.negf %200 : vector<2x128xf32>
    %202 = math.exp %201 : vector<2x128xf32>
    %cst_76 = arith.constant 1.000000e+00 : f32
    %203 = vector.broadcast %cst_76 : f32 to vector<2x128xf32>
    %204 = arith.addf %203, %202 : vector<2x128xf32>
    %205 = arith.divf %203, %204 : vector<2x128xf32>
    %206 = vector.extract_strided_slice %187 {offsets = [0, 256], sizes = [2, 128], strides = [1, 1]} : vector<2x384xf32> to vector<2x128xf32>
    %207 = vector.extract_strided_slice %189 {offsets = [0, 256], sizes = [2, 128], strides = [1, 1]} : vector<2x384xf32> to vector<2x128xf32>
    %208 = arith.addf %207, %14 : vector<2x128xf32>
    %209 = arith.mulf %197, %208 : vector<2x128xf32>
    %210 = arith.addf %206, %209 : vector<2x128xf32>
    %211 = math.tanh %210 : vector<2x128xf32>
    %cst_77 = arith.constant 1.000000e+00 : f32
    %212 = vector.broadcast %cst_77 : f32 to vector<2x128xf32>
    %213 = arith.subf %212, %205 : vector<2x128xf32>
    %214 = arith.mulf %213, %211 : vector<2x128xf32>
    %215 = arith.mulf %205, %182 : vector<2x128xf32>
    %216 = arith.addf %214, %215 : vector<2x128xf32>
    %c0_78 = arith.constant 0 : index
    %c5_79 = arith.constant 5 : index
    %c0_80 = arith.constant 0 : index
    %217 = vector.load %arg14[%c0_78, %c5_79, %c0_80] : memref<2x8x128xf32, #tpu.memory_space<vmem>>, vector<2x1x128xf32>
    %218 = vector.shape_cast %217 : vector<2x1x128xf32> to vector<2x128xf32>
    %219 = vector.shape_cast %216 : vector<2x128xf32> to vector<2x1x128xf32>
    tpu.vector_store %arg14[%c0_78, %c5_79, %c0_80], %219 {strides = array<i32>} : memref<2x8x128xf32, #tpu.memory_space<vmem>>, vector<2x1x128xf32>,
    %c0_81 = arith.constant 0 : index
    %c6 = arith.constant 6 : index
    %c0_82 = arith.constant 0 : index
    %220 = vector.load %arg15[%c0_81, %c6, %c0_82] : memref<2x8x384xf32, #tpu.memory_space<vmem>>, vector<2x1x384xf32>
    %221 = vector.shape_cast %220 : vector<2x1x384xf32> to vector<2x384xf32>
    %c0_83 = arith.constant 0 : index
    %c0_84 = arith.constant 0 : index
    %222 = vector.load %arg6[%c0_83, %c0_84] : memref<128x384xf32, #tpu.memory_space<vmem>>, vector<128x384xf32>
    %cst_85 = arith.constant dense<0.000000e+00> : vector<2x384xf32>
    %223 = tpu.matmul %216, %222, %cst_85 {dimension_numbers = #tpu.dot_dimension_numbers<[1], [0], [0], [1], [0, 0, 1, 1], [], []>} : vector<2x128xf32>, vector<128x384xf32>, vector<2x384xf32> -> vector<2x384xf32>
    %224 = vector.extract_strided_slice %221 {offsets = [0, 0], sizes = [2, 128], strides = [1, 1]} : vector<2x384xf32> to vector<2x128xf32>
    %225 = vector.extract_strided_slice %223 {offsets = [0, 0], sizes = [2, 128], strides = [1, 1]} : vector<2x384xf32> to vector<2x128xf32>
    %226 = arith.addf %224, %225 : vector<2x128xf32>
    %227 = arith.negf %226 : vector<2x128xf32>
    %228 = math.exp %227 : vector<2x128xf32>
    %cst_86 = arith.constant 1.000000e+00 : f32
    %229 = vector.broadcast %cst_86 : f32 to vector<2x128xf32>
    %230 = arith.addf %229, %228 : vector<2x128xf32>
    %231 = arith.divf %229, %230 : vector<2x128xf32>
    %232 = vector.extract_strided_slice %221 {offsets = [0, 128], sizes = [2, 128], strides = [1, 1]} : vector<2x384xf32> to vector<2x128xf32>
    %233 = vector.extract_strided_slice %223 {offsets = [0, 128], sizes = [2, 128], strides = [1, 1]} : vector<2x384xf32> to vector<2x128xf32>
    %234 = arith.addf %232, %233 : vector<2x128xf32>
    %235 = arith.negf %234 : vector<2x128xf32>
    %236 = math.exp %235 : vector<2x128xf32>
    %cst_87 = arith.constant 1.000000e+00 : f32
    %237 = vector.broadcast %cst_87 : f32 to vector<2x128xf32>
    %238 = arith.addf %237, %236 : vector<2x128xf32>
    %239 = arith.divf %237, %238 : vector<2x128xf32>
    %240 = vector.extract_strided_slice %221 {offsets = [0, 256], sizes = [2, 128], strides = [1, 1]} : vector<2x384xf32> to vector<2x128xf32>
    %241 = vector.extract_strided_slice %223 {offsets = [0, 256], sizes = [2, 128], strides = [1, 1]} : vector<2x384xf32> to vector<2x128xf32>
    %242 = arith.addf %241, %14 : vector<2x128xf32>
    %243 = arith.mulf %231, %242 : vector<2x128xf32>
    %244 = arith.addf %240, %243 : vector<2x128xf32>
    %245 = math.tanh %244 : vector<2x128xf32>
    %cst_88 = arith.constant 1.000000e+00 : f32
    %246 = vector.broadcast %cst_88 : f32 to vector<2x128xf32>
    %247 = arith.subf %246, %239 : vector<2x128xf32>
    %248 = arith.mulf %247, %245 : vector<2x128xf32>
    %249 = arith.mulf %239, %216 : vector<2x128xf32>
    %250 = arith.addf %248, %249 : vector<2x128xf32>
    %c0_89 = arith.constant 0 : index
    %c6_90 = arith.constant 6 : index
    %c0_91 = arith.constant 0 : index
    %251 = vector.load %arg14[%c0_89, %c6_90, %c0_91] : memref<2x8x128xf32, #tpu.memory_space<vmem>>, vector<2x1x128xf32>
    %252 = vector.shape_cast %251 : vector<2x1x128xf32> to vector<2x128xf32>
    %253 = vector.shape_cast %250 : vector<2x128xf32> to vector<2x1x128xf32>
    tpu.vector_store %arg14[%c0_89, %c6_90, %c0_91], %253 {strides = array<i32>} : memref<2x8x128xf32, #tpu.memory_space<vmem>>, vector<2x1x128xf32>,
    %c0_92 = arith.constant 0 : index
    %c7 = arith.constant 7 : index
    %c0_93 = arith.constant 0 : index
    %254 = vector.load %arg15[%c0_92, %c7, %c0_93] : memref<2x8x384xf32, #tpu.memory_space<vmem>>, vector<2x1x384xf32>
    %255 = vector.shape_cast %254 : vector<2x1x384xf32> to vector<2x384xf32>
    %c0_94 = arith.constant 0 : index
    %c0_95 = arith.constant 0 : index
    %256 = vector.load %arg6[%c0_94, %c0_95] : memref<128x384xf32, #tpu.memory_space<vmem>>, vector<128x384xf32>
    %cst_96 = arith.constant dense<0.000000e+00> : vector<2x384xf32>
    %257 = tpu.matmul %250, %256, %cst_96 {dimension_numbers = #tpu.dot_dimension_numbers<[1], [0], [0], [1], [0, 0, 1, 1], [], []>} : vector<2x128xf32>, vector<128x384xf32>, vector<2x384xf32> -> vector<2x384xf32>
    %258 = vector.extract_strided_slice %255 {offsets = [0, 0], sizes = [2, 128], strides = [1, 1]} : vector<2x384xf32> to vector<2x128xf32>
    %259 = vector.extract_strided_slice %257 {offsets = [0, 0], sizes = [2, 128], strides = [1, 1]} : vector<2x384xf32> to vector<2x128xf32>
    %260 = arith.addf %258, %259 : vector<2x128xf32>
    %261 = arith.negf %260 : vector<2x128xf32>
    %262 = math.exp %261 : vector<2x128xf32>
    %cst_97 = arith.constant 1.000000e+00 : f32
    %263 = vector.broadcast %cst_97 : f32 to vector<2x128xf32>
    %264 = arith.addf %263, %262 : vector<2x128xf32>
    %265 = arith.divf %263, %264 : vector<2x128xf32>
    %266 = vector.extract_strided_slice %255 {offsets = [0, 128], sizes = [2, 128], strides = [1, 1]} : vector<2x384xf32> to vector<2x128xf32>
    %267 = vector.extract_strided_slice %257 {offsets = [0, 128], sizes = [2, 128], strides = [1, 1]} : vector<2x384xf32> to vector<2x128xf32>
    %268 = arith.addf %266, %267 : vector<2x128xf32>
    %269 = arith.negf %268 : vector<2x128xf32>
    %270 = math.exp %269 : vector<2x128xf32>
    %cst_98 = arith.constant 1.000000e+00 : f32
    %271 = vector.broadcast %cst_98 : f32 to vector<2x128xf32>
    %272 = arith.addf %271, %270 : vector<2x128xf32>
    %273 = arith.divf %271, %272 : vector<2x128xf32>
    %274 = vector.extract_strided_slice %255 {offsets = [0, 256], sizes = [2, 128], strides = [1, 1]} : vector<2x384xf32> to vector<2x128xf32>
    %275 = vector.extract_strided_slice %257 {offsets = [0, 256], sizes = [2, 128], strides = [1, 1]} : vector<2x384xf32> to vector<2x128xf32>
    %276 = arith.addf %275, %14 : vector<2x128xf32>
    %277 = arith.mulf %265, %276 : vector<2x128xf32>
    %278 = arith.addf %274, %277 : vector<2x128xf32>
    %279 = math.tanh %278 : vector<2x128xf32>
    %cst_99 = arith.constant 1.000000e+00 : f32
    %280 = vector.broadcast %cst_99 : f32 to vector<2x128xf32>
    %281 = arith.subf %280, %273 : vector<2x128xf32>
    %282 = arith.mulf %281, %279 : vector<2x128xf32>
    %283 = arith.mulf %273, %250 : vector<2x128xf32>
    %284 = arith.addf %282, %283 : vector<2x128xf32>
    %c0_100 = arith.constant 0 : index
    %c7_101 = arith.constant 7 : index
    %c0_102 = arith.constant 0 : index
    %285 = vector.load %arg14[%c0_100, %c7_101, %c0_102] : memref<2x8x128xf32, #tpu.memory_space<vmem>>, vector<2x1x128xf32>
    %286 = vector.shape_cast %285 : vector<2x1x128xf32> to vector<2x128xf32>
    %287 = vector.shape_cast %284 : vector<2x128xf32> to vector<2x1x128xf32>
    tpu.vector_store %arg14[%c0_100, %c7_101, %c0_102], %287 {strides = array<i32>} : memref<2x8x128xf32, #tpu.memory_space<vmem>>, vector<2x1x128xf32>,
    %c0_103 = arith.constant 0 : index
    %c0_104 = arith.constant 0 : index
    %288 = vector.load %arg13[%c0_103, %c0_104] : memref<2x128xf32, #tpu.memory_space<vmem>>, vector<2x128xf32>
    tpu.vector_store %arg13[%c0_103, %c0_104], %284 {strides = array<i32>} : memref<2x128xf32, #tpu.memory_space<vmem>>, vector<2x128xf32>,
    %c0_105 = arith.constant 0 : index
    %c0_106 = arith.constant 0 : index
    %c0_107 = arith.constant 0 : index
    %289 = vector.load %arg14[%c0_105, %c0_106, %c0_107] : memref<2x8x128xf32, #tpu.memory_space<vmem>>, vector<2x8x128xf32>
    %290 = vector.shape_cast %289 : vector<2x8x128xf32> to vector<16x128xf32>
    %c0_108 = arith.constant 0 : index
    %c0_109 = arith.constant 0 : index
    %291 = vector.load %arg8[%c0_108, %c0_109] : memref<128x10xf32, #tpu.memory_space<vmem>>, vector<128x10xf32>
    %cst_110 = arith.constant dense<0.000000e+00> : vector<16x10xf32>
    %292 = tpu.matmul %290, %291, %cst_110 {dimension_numbers = #tpu.dot_dimension_numbers<[1], [0], [0], [1], [0, 0, 1, 1], [], []>} : vector<16x128xf32>, vector<128x10xf32>, vector<16x10xf32> -> vector<16x10xf32>
    %c0_111 = arith.constant 0 : index
    %c0_112 = arith.constant 0 : index
    %293 = vector.load %arg9[%c0_111, %c0_112] : memref<1x10xf32, #tpu.memory_space<vmem>>, vector<1x10xf32>
    %294 = vector.broadcast %293 : vector<1x10xf32> to vector<16x10xf32>
    %295 = arith.addf %292, %294 : vector<16x10xf32>
    %296 = vector.shape_cast %295 : vector<16x10xf32> to vector<2x8x10xf32>
    %c0_113 = arith.constant 0 : index
    %c0_114 = arith.constant 0 : index
    %c0_115 = arith.constant 0 : index
    %297 = vector.load %arg11[%c0_113, %c0_114, %c0_115] : memref<2x8x10xf32, #tpu.memory_space<vmem>>, vector<2x8x10xf32>
    tpu.vector_store %arg11[%c0_113, %c0_114, %c0_115], %296 {strides = array<i32>} : memref<2x8x10xf32, #tpu.memory_space<vmem>>, vector<2x8x10xf32>,
    %cst_116 = arith.constant dense<0xFF800000> : vector<2x8xf32>
    %298 = vector.multi_reduction <maximumf>, %296, %cst_116 [2] : vector<2x8x10xf32> to vector<2x8xf32>
    %299 = vector.shape_cast %298 : vector<2x8xf32> to vector<2x8x1xf32>
    %300 = vector.broadcast %299 : vector<2x8x1xf32> to vector<2x8x10xf32>
    %301 = arith.subf %296, %300 : vector<2x8x10xf32>
    %302 = math.exp %301 : vector<2x8x10xf32>
    %cst_117 = arith.constant dense<0.000000e+00> : vector<2x8xf32>
    %303 = vector.multi_reduction <add>, %302, %cst_117 [2] : vector<2x8x10xf32> to vector<2x8xf32>
    %304 = vector.shape_cast %303 : vector<2x8xf32> to vector<2x8x1xf32>
    %305 = tpu.reciprocal %304 : vector<2x8x1xf32> -> vector<2x8x1xf32>
    %306 = vector.broadcast %305 : vector<2x8x1xf32> to vector<2x8x10xf32>
    %307 = arith.mulf %302, %306 : vector<2x8x10xf32>
    %c0_118 = arith.constant 0 : index
    %c0_119 = arith.constant 0 : index
    %c0_120 = arith.constant 0 : index
    %308 = vector.load %arg10[%c0_118, %c0_119, %c0_120] : memref<2x8x10xf32, #tpu.memory_space<vmem>>, vector<2x8x10xf32>
    tpu.vector_store %arg10[%c0_118, %c0_119, %c0_120], %307 {strides = array<i32>} : memref<2x8x10xf32, #tpu.memory_space<vmem>>, vector<2x8x10xf32>,
    %c0_i32_121 = arith.constant 0 : i32
    %309 = arith.cmpi eq, %arg1, %c0_i32_121 : i32
    %310 = arith.extui %309 : i1 to i32
    %c0_i32_122 = arith.constant 0 : i32
    %311 = arith.cmpi ne, %310, %c0_i32_122 : i32
    scf.if %311 {
      %c0_123 = arith.constant 0 : index
      %c0_124 = arith.constant 0 : index
      %312 = vector.load %arg12[%c0_123, %c0_124] : memref<2x128xf32, #tpu.memory_space<vmem>>, vector<2x128xf32>
      tpu.vector_store %arg12[%c0_123, %c0_124], %284 {strides = array<i32>} : memref<2x128xf32, #tpu.memory_space<vmem>>, vector<2x128xf32>,
    } else {
    }
    return
  }
  func.func @transform_0(%arg0: i32, %arg1: i32) -> (i32, i32) {
    %c0_i32 = arith.constant 0 : i32
    %c0_i32_0 = arith.constant 0 : i32
    return %arg0, %c0_i32 : i32, i32
  }
  func.func @transform_1(%arg0: i32, %arg1: i32) -> (i32, i32, i32) {
    %c0_i32 = arith.constant 0 : i32
    %c0_i32_0 = arith.constant 0 : i32
    return %arg0, %arg1, %c0_i32 : i32, i32, i32
  }
  func.func @transform_2(%arg0: i32, %arg1: i32) -> (i32, i32) {
    %c0_i32 = arith.constant 0 : i32
    %c0_i32_0 = arith.constant 0 : i32
    %c0_i32_1 = arith.constant 0 : i32
    return %c0_i32, %c0_i32_0 : i32, i32
  }
  func.func @transform_3(%arg0: i32, %arg1: i32) -> (i32, i32) {
    %c0_i32 = arith.constant 0 : i32
    %c0_i32_0 = arith.constant 0 : i32
    %c0_i32_1 = arith.constant 0 : i32
    return %c0_i32, %c0_i32_0 : i32, i32
  }
  func.func @transform_4(%arg0: i32, %arg1: i32) -> (i32, i32) {
    %c0_i32 = arith.constant 0 : i32
    %c0_i32_0 = arith.constant 0 : i32
    %c0_i32_1 = arith.constant 0 : i32
    return %c0_i32, %c0_i32_0 : i32, i32
  }
  func.func @transform_5(%arg0: i32, %arg1: i32) -> (i32, i32) {
    %c0_i32 = arith.constant 0 : i32
    %c0_i32_0 = arith.constant 0 : i32
    %c0_i32_1 = arith.constant 0 : i32
    return %c0_i32, %c0_i32_0 : i32, i32
  }
  func.func @transform_6(%arg0: i32, %arg1: i32) -> (i32, i32) {
    %c0_i32 = arith.constant 0 : i32
    %c0_i32_0 = arith.constant 0 : i32
    %c0_i32_1 = arith.constant 0 : i32
    return %c0_i32, %c0_i32_0 : i32, i32
  }
  func.func @transform_7(%arg0: i32, %arg1: i32) -> (i32, i32) {
    %c0_i32 = arith.constant 0 : i32
    %c0_i32_0 = arith.constant 0 : i32
    %c0_i32_1 = arith.constant 0 : i32
    return %c0_i32, %c0_i32_0 : i32, i32
  }
  func.func @transform_8(%arg0: i32, %arg1: i32) -> (i32, i32, i32) {
    %c0_i32 = arith.constant 0 : i32
    %c0_i32_0 = arith.constant 0 : i32
    return %arg0, %arg1, %c0_i32 : i32, i32, i32
  }
  func.func @transform_9(%arg0: i32, %arg1: i32) -> (i32, i32, i32) {
    %c0_i32 = arith.constant 0 : i32
    %c0_i32_0 = arith.constant 0 : i32
    return %arg0, %arg1, %c0_i32 : i32, i32, i32
  }
  func.func @transform_10(%arg0: i32, %arg1: i32) -> (i32, i32) {
    %c0_i32 = arith.constant 0 : i32
    %c0_i32_0 = arith.constant 0 : i32
    return %arg0, %c0_i32 : i32, i32
  }
}

</mosaic_0001>

<bundles_post_ra>
// kernel: evid_gru_forward.1
= control target key start
LH: loop header
LB: loop body
LE: loop exit
PB: predicated region body
PF: predicated region fallthrough
CT: control target
= control target key end

     0   :  { %16 = vsyncpa [#allocation6], 0  ;;  %v4391_v7 = vmov 0.0   ;;  %vm65_vm0 = vcmask 130048   ;;  %v4392_v38 = vmov 0.0|0.0   ;;  %vm4393_vm1 = vmmov 0   ;;  %s5521_s0 = inlined_call_operand.vmem [shape: f32[2,128], index: 0, kind: input, shape index: {}]   ;;  %s5522_s1 = inlined_call_operand.vmem [shape: f32[2,8,16], index: 1, kind: input, shape index: {}]   ;;  %s5523_s2 = inlined_call_operand.vmem [shape: f32[16,384], index: 2, kind: input, shape index: {}]   ;;  %s5524_s3 = inlined_call_operand.vmem [shape: f32[1,384], index: 3, kind: input, shape index: {}]   ;;  %s5525_s4 = inlined_call_operand.vmem [shape: f32[128,384], index: 4, kind: input, shape index: {}]   ;;  %s5526_s5 = inlined_call_operand.vmem [shape: f32[1,128], index: 5, kind: input, shape index: {}]   ;;  %s5527_s6 = inlined_call_operand.vmem [shape: f32[128,10], index: 6, kind: input, shape index: {}]   ;;  %s5528_s7 = inlined_call_operand.vmem [shape: f32[1,10], index: 7, kind: input, shape index: {}]   ;;  %s5529_s8 = inlined_call_operand.hbm [shape: f32[2,8,10], index: 8, kind: output, shape index: {0}]   ;;  %s5530_s9 = inlined_call_operand.hbm [shape: f32[2,8,10], index: 9, kind: output, shape index: {1}]   ;;  %s5531_s10 = inlined_call_operand.vmem [shape: f32[2,128], index: 10, kind: output, shape index: {2}]  }
   0x1   :  { %v242_v0 = vld [vmem:[%s5525_s4 + $0x8] sm:$0xff]  ;;  %v245_v1 = vld [vmem:[%s5525_s4 + $0x20] sm:$0xff]  ;;  %v244_v4 = vld [vmem:[%s5525_s4 + $0x18] sm:$0xff]  ;;  %136 = vmatprep.mubr.f32.mxu1 %v4391_v7  ;;  %353 = vmatprep.mubr.f32.mxu0 %v4391_v7 }
   0x2   :  { %v241_v2 = vld [vmem:[%s5525_s4] sm:$0xff]  ;;  %v4463_v3 = vpack.c.bf16 %v245_v1, %v242_v0  ;;  %v248_v5 = vld [vmem:[%s5525_s4 + $0x38] sm:$0xff]  ;;  %v251_v6 = vld [vmem:[%s5525_s4 + $0x50] sm:$0xff] }
   0x3   :  { %v4476_v8 = vpack.c.bf16 %v244_v4, %v241_v2  ;;  %v4478_v9 = vpack.c.bf16 %v251_v6, %v248_v5  ;;  %v247_v10 = vld [vmem:[%s5525_s4 + $0x30] sm:$0xff]  ;;  %v250_v11 = vld [vmem:[%s5525_s4 + $0x48] sm:$0xff]  ;;  %v46_v13 = vld [vmem:[%s5523_s2 + $0x20] sm:$0xff] }
   0x4   :  { %v43_v12 = vld [vmem:[%s5523_s2 + $0x8] sm:$0xff]  ;;  %3687 = vmatprep.subr.bf16.mxu0 %v4463_v3  ;;  %v42_v14 = vld [vmem:[%s5523_s2] sm:$0xff]  ;;  %v45_v15 = vld [vmem:[%s5523_s2 + $0x18] sm:$0xff]  ;;  %v4500_v16 = vpack.c.bf16 %v250_v11, %v247_v10 }
   0x5   :  { %3689 = vmatpush1.bf16.msra.mxu0 %v4476_v8  ;;  %v3678_v17 = vpack.c.bf16 %v46_v13, %v43_v12  ;;  %v3680_v18 = vpack.c.bf16 %v45_v15, %v42_v14  ;;  %v254_v19 = vld [vmem:[%s5525_s4 + $0x68] sm:$0xff]  ;;  %v257_v20 = vld [vmem:[%s5525_s4 + $0x80] sm:$0xff]  ;;  %v256_v23 = vld [vmem:[%s5525_s4 + $0x78] sm:$0xff] }
   0x6   :  { %3691 = vmatprep.subr.bf16.mxu0 %v4478_v9  ;;  %v4509_v21 = vpack.c.bf16 %v257_v20, %v254_v19  ;;  %v253_v22 = vld [vmem:[%s5525_s4 + $0x60] sm:$0xff]  ;;  %v260_v24 = vld [vmem:[%s5525_s4 + $0x98] sm:$0xff]  ;;  %v263_v25 = vld [vmem:[%s5525_s4 + $0xb0] sm:$0xff] }
   0x7   :  { %3679 = vmatprep.subr.bf16.mxu1 %v3678_v17  ;;  %v40_v26 = vld [vmem:[%s5522_s1] sm:$0xff]  ;;  %v44_v27 = vld [vmem:[%s5523_s2 + $0x10] sm:$0xff]  ;;  %v47_v28 = vld [vmem:[%s5523_s2 + $0x28] sm:$0xff]  ;;  %v4533_v29 = vpack.c.bf16 %v256_v23, %v253_v22  ;;  %v4536_v31 = vpack.c.bf16 %v263_v25, %v260_v24 }
   0x8   :  { %3681 = vmatpush1.bf16.msra.mxu1 %v3680_v18  ;;  %v3682_v30 = vpack.c.bf16 %v47_v28, %v44_v27  ;;  %v259_v32 = vld [vmem:[%s5525_s4 + $0x90] sm:$0xff]  ;;  %v262_v33 = vld [vmem:[%s5525_s4 + $0xa8] sm:$0xff]  ;;  %v269_v35 = vld [vmem:[%s5525_s4 + $0xe0] sm:$0xff] }
   0x9   :  { %3693 = vmatpush1.bf16.msra.mxu0 %v4500_v16  ;;  %v266_v34 = vld [vmem:[%s5525_s4 + $0xc8] sm:$0xff]  ;;  %v4556_v37 = vpack.c.bf16 %v262_v33, %v259_v32  ;;  %v243_v39 = vld [vmem:[%s5525_s4 + $0x10] sm:$0xff]  ;;  %v265_v42 = vld [vmem:[%s5525_s4 + $0xc0] sm:$0xff] }
   0xa   :  { %3695 = vmatprep.subr.bf16.mxu0 %v4509_v21  ;;  %3683 = vmatprep.subr.bf16.mxu1 %v3682_v30  ;;  %v41_v36 = vld [vmem:[%s5522_s1 + $0x8] sm:$0xff]  ;;  %v4566_v41 = vpack.c.bf16 %v269_v35, %v266_v34  ;;  %v268_v43 = vld [vmem:[%s5525_s4 + $0xd8] sm:$0xff]  ;;  %v275_v45 = vld [vmem:[%s5525_s4 + $0x110] sm:$0xff] }
   0xb   :  { %3158 = vmatmul.mubr.msk.f32.vlgmr.msra.gmra.mrb[0].mxu1 %vm65_vm0, %v40_v26  ;;  %v246_v40 = vld [vmem:[%s5525_s4 + $0x28] sm:$0xff]  ;;  %v272_v44 = vld [vmem:[%s5525_s4 + $0xf8] sm:$0xff]  ;;  %v38_v46 = vld [vmem:[%s5521_s0] sm:$0x3]  ;;  %v4588_v48 = vpack.c.bf16 %v268_v43, %v265_v42 }
   0xc   :  { %142 = vmatprep.mubr.f32.mxu1 %v4391_v7  ;;  %3685 = vmatpush3.bf16.msra.mxu1 %v3682_v30  ;;  %v4585_v47 = vpack.c.bf16 %v246_v40, %v243_v39  ;;  %39 = vst [vmem:[#allocation2] sm:$0x3] %v38_v46  ;;  %v249_v49 = vld [vmem:[%s5525_s4 + $0x40] sm:$0xff]  ;;  %v252_v50 = vld [vmem:[%s5525_s4 + $0x58] sm:$0xff]  ;;  %v4597_v51 = vpack.c.bf16 %v275_v45, %v272_v44  ;;  %v271_v52 = vld [vmem:[%s5525_s4 + $0xf0] sm:$0xff] }
   0xd   :  { %3697 = vmatpush1.bf16.msra.mxu0 %v4533_v29  ;;  %3718 = vmatprep.subr.bf16.mxu1 %v4392_v38  ;;  %v274_v53 = vld [vmem:[%s5525_s4 + $0x108] sm:$0xff]  ;;  %v281_v55 = vld [vmem:[%s5525_s4 + $0x140] sm:$0xff]  ;;  %v4613_v56 = vpack.c.bf16 %v252_v50, %v249_v49 }
   0xe   :  { %3699 = vmatprep.subr.bf16.mxu0 %v4536_v31  ;;  %v278_v54 = vld [vmem:[%s5525_s4 + $0x128] sm:$0xff] }
   0xf   :  { %3159 = vmatmul.mubr.msk.f32.gmra.mrb[2].mxu1 %vm65_vm0, %v41_v36 }
  0x10   :  { %3360 = vmatprep.mubr.msk.f32.mxu1 %vm65_vm0, %v40_v26 }
  0x11   :  { %3701 = vmatpush1.bf16.msra.mxu0 %v4556_v37 }
  0x12   :  { %3703 = vmatprep.subr.bf16.mxu0 %v4566_v41 }
  0x13   :  { %3361 = vmatmul.mubr.msk.f32.vlgmr.msra.gmra.mrb[4].mxu1 %vm65_vm0, %v41_v36 }
  0x14   :  { %3720 = vmatpush3.bf16.msra.mxu1 %v4585_v47  ;;  %3395 = vmatprep.mubr.msk.f32.mxu1 %vm4393_vm1, %v4391_v7 }
  0x15   :  { %17 = vsyncpa [#allocation8], 0  ;;  %3705 = vmatpush1.bf16.msra.mxu0 %v4588_v48  ;;  %v4618_v57 = vpack.c.bf16 %v274_v53, %v271_v52  ;;  %3721 = vmatprep.subr.bf16.mxu1 %v4392_v38  ;;  %v255_v58 = vld [vmem:[%s5525_s4 + $0x70] sm:$0xff]  ;;  %v258_v59 = vld [vmem:[%s5525_s4 + $0x88] sm:$0xff]  ;;  %v4628_v60 = vpack.c.bf16 %v281_v55, %v278_v54  ;;  %v50_v30 = vlaneseq  ;;  %vm3091_vm2 = vcmask 80896  }
  0x16   :  { %3707 = vmatprep.subr.bf16.mxu0 %v4597_v51  ;;  %v277_v61 = vld [vmem:[%s5525_s4 + $0x120] sm:$0xff]  ;;  %v280_v62 = vld [vmem:[%s5525_s4 + $0x138] sm:$0xff]  ;;  %v287_v0 = vld [vmem:[%s5525_s4 + $0x170] sm:$0xff]  ;;  %v4643_v1 = vpack.c.bf16 %v258_v59, %v255_v58  ;;  %v4394_v59 = vmov 1966171168  }
  0x17   :  { %v284_v63 = vld [vmem:[%s5525_s4 + $0x158] sm:$0xff]  ;;  %v4646_v2 = vpack.c.bf16 %v280_v62, %v277_v61  ;;  %v261_v4 = vld [vmem:[%s5525_s4 + $0xa0] sm:$0xff]  ;;  %v283_v10 = vld [vmem:[%s5525_s4 + $0x150] sm:$0xff]  ;;  %v51_v32 = vshrl.u32 %v50_v30, 7  ;;  %v432_v61 = vunpack.c.l.s4 %v4394_v59 }
  0x18   :  { %3723 = vmatpush3.bf16.msra.mxu1 %v4613_v56  ;;  %v264_v5 = vld [vmem:[%s5525_s4 + $0xb8] sm:$0xff]  ;;  %v4656_v6 = vpack.c.bf16 %v287_v0, %v284_v63  ;;  %v286_v11 = vld [vmem:[%s5525_s4 + $0x168] sm:$0xff]  ;;  %v267_v14 = vld [vmem:[%s5525_s4 + $0xd0] sm:$0xff] }
  0x19   :  { %3709 = vmatpush1.bf16.msra.mxu0 %v4618_v57  ;;  %3724 = vmatprep.subr.bf16.mxu1 %v4392_v38  ;;  %v4665_v12 = vpack.c.bf16 %v264_v5, %v261_v4  ;;  %v4668_v13 = vpack.c.bf16 %v286_v11, %v283_v10  ;;  %v270_v15 = vld [vmem:[%s5525_s4 + $0xe8] sm:$0xff]  ;;  %v4682_v18 = vld [vmem:[#allocation2] sm:$0x3]  ;;  %v276_v20 = vld [vmem:[%s5525_s4 + $0x118] sm:$0xff]  ;;  %v52_v33 = vsub.s32 0, %v51_v32  ;;  %v56_v34 = vsub.s32 1, %v51_v32 }
  0x1a   :  { %3711 = vmatprep.subr.bf16.mxu0 %v4628_v60  ;;  %v4679_v17 = vpack.c.bf16 %v270_v15, %v267_v14  ;;  %v273_v19 = vld [vmem:[%s5525_s4 + $0x100] sm:$0xff]  ;;  %v279_v23 = vld [vmem:[%s5525_s4 + $0x130] sm:$0xff]  ;;  %v282_v24 = vld [vmem:[%s5525_s4 + $0x148] sm:$0xff]  ;;  %v60_v44 = vsub.s32 2, %v51_v32  ;;  %v433_v62 = vunpack.c.0.s8 %v432_v61 }
  0x1b   :  { %v4694_v22 = vpack.c.bf16 %v276_v20, %v273_v19  ;;  %v4707_v25 = vpack.c.bf16 %v282_v24, %v279_v23  ;;  %v285_v26 = vld [vmem:[%s5525_s4 + $0x160] sm:$0xff]  ;;  %v288_v27 = vld [vmem:[%s5525_s4 + $0x178] sm:$0xff] }
  0x1c   :  { %3726 = vmatpush3.bf16.msra.mxu1 %v4643_v1  ;;  %v4719_v28 = vpack.c.bf16 %v288_v27, %v285_v26  ;;  %v4758_v63 = vsub.s32 %v433_v62, %v51_v32 }
  0x1d   :  { %3713 = vmatpush1.bf16.msra.mxu0 %v4646_v2  ;;  %3727 = vmatprep.subr.bf16.mxu1 %v4392_v38 }
  0x1e   :  { %3715 = vmatprep.subr.bf16.mxu0 %v4656_v6 }
  0x20   :  { %3729 = vmatpush3.bf16.msra.mxu1 %v4665_v12 }
  0x21   :  { %3717 = vmatpush1.bf16.msra.mxu0 %v4668_v13  ;;  %3730 = vmatprep.subr.bf16.mxu1 %v4392_v38 }
  0x22   :  { %3743 = vmatprep.subr.bf16.mxu0 %v4463_v3 }
  0x24   :  { %354 = vmatmul.mubr.f32.vlgmr.msra.gmra.mrb[0].mxu0 %v4682_v18  ;;  %3732 = vmatpush3.bf16.msra.mxu1 %v4679_v17 }
  0x25   :  { %3733 = vmatprep.subr.bf16.mxu1 %v4392_v38  ;;  %3745 = vmatpush1.bf16.msra.mxu0 %v4476_v8 }
  0x26   :  { %3747 = vmatprep.subr.bf16.mxu0 %v4478_v9  ;;  %719 = vmatprep.mubr.f32.mxu0 %v4391_v7 }
  0x28   :  { %3735 = vmatpush3.bf16.msra.mxu1 %v4694_v22 }
  0x29   :  { %3736 = vmatprep.subr.bf16.mxu1 %v4392_v38  ;;  %3749 = vmatpush1.bf16.msra.mxu0 %v4500_v16 }
  0x2a   :  { %3751 = vmatprep.subr.bf16.mxu0 %v4509_v21 }
  0x2c   :  { %3738 = vmatpush3.bf16.msra.mxu1 %v4707_v25 }
  0x2d   :  { %3739 = vmatprep.subr.bf16.mxu1 %v4392_v38  ;;  %3753 = vmatpush1.bf16.msra.mxu0 %v4533_v29 }
  0x2e   :  { %3755 = vmatprep.subr.bf16.mxu0 %v4536_v31 }
  0x30   :  { %3741 = vmatpush3.bf16.msra.mxu1 %v4719_v28 }
  0x31   :  { %3774 = vmatprep.subr.bf16.mxu1 %v4392_v38  ;;  %3757 = vmatpush1.bf16.msra.mxu0 %v4556_v37 }
  0x32   :  { %3759 = vmatprep.subr.bf16.mxu0 %v4566_v41 }
  0x33   :  { %3396 = vmatmul.mubr.f32.vlgmr.msra.gmra.mrb[6].mxu1 %v4682_v18 }
  0x34   :  { %3776 = vmatpush3.bf16.msra.mxu1 %v4585_v47  ;;  %3430 = vmatprep.mubr.msk.f32.mxu1 %vm4393_vm1, %v4391_v7 }
  0x35   :  { %3777 = vmatprep.subr.bf16.mxu1 %v4392_v38  ;;  %3761 = vmatpush1.bf16.msra.mxu0 %v4588_v48 }
  0x36   :  { %3763 = vmatprep.subr.bf16.mxu0 %v4597_v51 }
  0x38   :  { %3779 = vmatpush3.bf16.msra.mxu1 %v4613_v56 }
  0x39   :  { %3780 = vmatprep.subr.bf16.mxu1 %v4392_v38  ;;  %3765 = vmatpush1.bf16.msra.mxu0 %v4618_v57 }
  0x3a   :  { %3767 = vmatprep.subr.bf16.mxu0 %v4628_v60 }
  0x3c   :  { %3782 = vmatpush3.bf16.msra.mxu1 %v4643_v1 }
  0x3d   :  { %3783 = vmatprep.subr.bf16.mxu1 %v4392_v38  ;;  %3769 = vmatpush1.bf16.msra.mxu0 %v4646_v2 }
  0x3e   :  { %3771 = vmatprep.subr.bf16.mxu0 %v4656_v6 }
  0x40   :  { %3785 = vmatpush3.bf16.msra.mxu1 %v4665_v12 }
  0x41   :  { %3786 = vmatprep.subr.bf16.mxu1 %v4392_v38  ;;  %3773 = vmatpush1.bf16.msra.mxu0 %v4668_v13 }
  0x42   :  { %3799 = vmatprep.subr.bf16.mxu0 %v4463_v3  ;;  %v48_v3 = vld [vmem:[%s5524_s3] sm:$0x7] }
  0x43   :  { %v53_v35 = vrot.slane %v48_v3, %v52_v33  ;;  %v57_v36 = vrot.slane %v48_v3, %v56_v34  ;;  %v61_v52 = vrot.slane %v48_v3, %v60_v44 }
  0x44   :  { %3788 = vmatpush3.bf16.msra.mxu1 %v4679_v17 }
  0x45   :  { %3789 = vmatprep.subr.bf16.mxu1 %v4392_v38 }
  0x48   :  { %3791 = vmatpush3.bf16.msra.mxu1 %v4694_v22 }
  0x49   :  { %3792 = vmatprep.subr.bf16.mxu1 %v4392_v38 }
  0x4c   :  { %3794 = vmatpush3.bf16.msra.mxu1 %v4707_v25 }
  0x4d   :  { %3795 = vmatprep.subr.bf16.mxu1 %v4392_v38 }
  0x50   :  { %3797 = vmatpush3.bf16.msra.mxu1 %v4719_v28 }
  0x51   :  { %3830 = vmatprep.subr.bf16.mxu1 %v4392_v38 }
  0xde   :  { %v138_v39 = vpop.f32.mrb[0].mxu1 }
  0xdf   :  { %v139_v40 = vadd.f32 %v138_v39, %v53_v35  ;;  %v140_v42 = vpop.f32.mrb[1].mxu1 }
  0xe0   :  { %v141_v43 = vadd.f32 %v140_v42, %v57_v36 }
  0xe1   :  { %224 = vst [vmem:[#allocation4] sm:$0xff] %v139_v40 }
  0xe2   :  { %225 = vst [vmem:[#allocation4 + $0x8] sm:$0xff] %v141_v43  ;;  %v144_v45 = vpop.f32.mrb[2].mxu1  ;;  %v4769_v43 = vld [vmem:[%s5526_s5] ss:$0 sm:$0xff] }
  0xe3   :  { %v145_v46 = vadd.f32 %v144_v45, %v53_v35  ;;  %v146_v49 = vpop.f32.mrb[3].mxu1 }
  0xe4   :  { %v147_v50 = vadd.f32 %v146_v49, %v57_v36 }
  0xe5   :  { %227 = vst [vmem:[#allocation4 + $0x18] sm:$0xff] %v145_v46 }
  0xe6   :  { %228 = vst [vmem:[#allocation4 + $0x20] sm:$0xff] %v147_v50  ;;  %v3362_v53 = vpop.f32.mrb[4].mxu1 }
  0xe7   :  { %v221_v54 = vadd.f32 %v3362_v53, %v61_v52  ;;  %v215_v55 = vpop.f32.mrb[5].mxu1 }
  0xe8   :  { %v216_v58 = vadd.f32 %v215_v55, %v61_v52 }
  0xe9   :  { %229 = vst [vmem:[#allocation4 + $0x28] sm:$0xff] %v221_v54 }
  0xea   :  { %226 = vst [vmem:[#allocation4 + $0x10] sm:$0xff] %v216_v58 }
  0xf0   :  { %v240_v23 = vld [vmem:[#allocation4 + $0x18] ss:$8 sm:$0x7] }
  0xf1   :  { %v238_v11 = vld [vmem:[#allocation4] ss:$8 sm:$0x7]  ;;  %v472_v3 = vrot.slane %v240_v23, 1 }
  0xf2   :  { %v471_v27 = vrot.slane %v238_v11, 1 }
  0xf7   :  { %v355_v0 = vpop.f32.mrb[0].mxu0 }
  0xf8   :  { %v437_v4 = vrot.slane %v355_v0, %v4758_v63  ;;  %v357_v5 = vpop.f32.mrb[1].mxu0 }
  0xf9   :  { %v482_v10 = vrot.slane %v357_v5, %v4758_v63  ;;  %v542_v5 = vrot.slane %v238_v11, 2 }
  0xfa   :  { %v438_v14 = vcombine.high %v437_v4, %v437_v4  ;;  %v445_v15 = vrot.slane %v437_v4, %v4758_v63 }
  0xfb   :  { %v483_v19 = vcombine.high %v482_v10, %v482_v10  ;;  %v490_v20 = vrot.slane %v482_v10, %v4758_v63 }
  0xfc   :  { %v452_v24 = vrot.slane %v438_v14, %v4758_v63  ;;  %v455_v26 = vadd.f32 %v445_v15, %v238_v11  ;;  %v543_v15 = vrot.slane %v240_v23, 2 }
  0xfd   :  { %v497_v30 = vrot.slane %v483_v19, %v4758_v63  ;;  %v500_v34 = vadd.f32 %v490_v20, %v471_v27 }
  0xfe   :  { %v456_v32 = vadd.f32 %v452_v24, %v240_v23  ;;  %v3163_v33 = vmul.f32 -1.442695, %v455_v26  ;;  %v561_v26 = vrot.slane %v4682_v18, %v4758_v63 }
  0xff   :  { %v501_v36 = vadd.f32 %v497_v30, %v472_v3  ;;  %v3165_v39 = vmul.f32 -1.442695, %v500_v34 }
 0x100   :  { %4174 = vpow2.f32 %v3163_v33  ;;  %v3164_v35 = vmul.f32 -1.442695, %v456_v32  ;;  %v562_v27 = vcombine.high %v561_v26, %v561_v26  ;;  %v569_v32 = vrot.slane %v561_v26, %v4758_v63 }
 0x101   :  { %v3166_v40 = vmul.f32 -1.442695, %v501_v36 }
 0x102   :  { %4176 = vpow2.f32 %v3164_v35  ;;  %v576_v11 = vrot.slane %v562_v27, %v4758_v63 }
 0x103   :  { %4178 = vpow2.f32 %v3165_v39 }
 0x104   :  { %4180 = vpow2.f32 %v3166_v40 }
 0x106   :  { %v426_v42 = vpop.f32.mrb[6].mxu1 }
 0x107   :  { %v3397_v44 = vpop.f32.mrb[7].mxu1  ;;  %v514_v46 = vadd.f32 %v4769_v43, %v426_v42 }
 0x109   :  { %v522_v53 = vrot.slane %v514_v46, %v4758_v63 }
 0x10a   :  { %v4175_v45 = vpop.eup %4174 }
 0x10b   :  { %v463_v49 = vadd.f32 1.0, %v4175_v45  ;;  %v523_v55 = vcombine.high %v522_v53, %v522_v53  ;;  %v530_v61 = vrot.slane %v522_v53, %v4758_v63 }
 0x10c   :  { %v4177_v50 = vpop.eup %4176 }
 0x10d   :  { %v464_v52 = vadd.f32 1.0, %v4177_v50  ;;  %4182 = vrcp.f32 %v463_v49  ;;  %v4179_v54 = vpop.eup %4178  ;;  %v537_v0 = vrot.slane %v523_v55, %v4758_v63 }
 0x10e   :  { %v4181_v58 = vpop.eup %4180  ;;  %v508_v59 = vadd.f32 1.0, %v4179_v54 }
 0x10f   :  { %4184 = vrcp.f32 %v464_v52  ;;  %v509_v62 = vadd.f32 1.0, %v4181_v58 }
 0x110   :  { %4186 = vrcp.f32 %v508_v59 }
 0x111   :  { %4188 = vrcp.f32 %v509_v62 }
 0x117   :  { %v4183_v4 = vpop.eup %4182 }
 0x118   :  { %v540_v10 = vmul.f32 %v4183_v4, %v530_v61 }
 0x119   :  { %v4185_v14 = vpop.eup %4184 }
 0x11a   :  { %v541_v19 = vmul.f32 %v4185_v14, %v537_v0  ;;  %v546_v20 = vadd.f32 %v542_v5, %v540_v10  ;;  %v4187_v30 = vpop.eup %4186 }
 0x11b   :  { %v4189_v33 = vpop.eup %4188  ;;  %v550_v3 = vsub.f32 1.0, %v4187_v30  ;;  %v579_v36 = vmul.f32 %v4187_v30, %v569_v32 }
 0x11c   :  { %v547_v24 = vadd.f32 %v543_v15, %v541_v19  ;;  %4190 = vtanh.f32 %v546_v20  ;;  %v551_v35 = vsub.f32 1.0, %v4189_v33  ;;  %v580_v42 = vmul.f32 %v4189_v33, %v576_v11 }
 0x11e   :  { %4192 = vtanh.f32 %v547_v24 }
 0x126   :  { %v4191_v34 = vpop.eup %4190 }
 0x127   :  { %v552_v23 = vmul.f32 %v4191_v34, %v550_v3 }
 0x128   :  { %v4193_v39 = vpop.eup %4192 }
 0x129   :  { %v553_v40 = vmul.f32 %v4193_v39, %v551_v35  ;;  %v4779_v44 = vadd.f32 %v579_v36, %v552_v23 }
 0x12b   :  { %v4781_v45 = vadd.f32 %v580_v42, %v553_v40  ;;  %583 = vst [vmem:[#allocation3] sm:$0x1] %v4779_v44 }
 0x12d   :  { %584 = vst [vmem:[#allocation3 + $0x8] sm:$0x1] %v4781_v45  ;;  %v639_v18 = vcombine.low %v4779_v44, %v4781_v45 }
 0x12f   :  { %v646_v46 = vrot.slane %v639_v18, %v4758_v63 }
 0x131   :  { %v653_v49 = vrot.slane %v646_v46, %v4758_v63 }
 0x133   :  { %720 = vmatmul.mubr.f32.vlgmr.msra.gmra.mrb[2].mxu0 %v653_v49  ;;  %3431 = vmatmul.mubr.f32.vlgmr.msra.gmra.mrb[8].mxu1 %v653_v49 }
 0x134   :  { %3801 = vmatpush1.bf16.msra.mxu0 %v4476_v8  ;;  %3832 = vmatpush3.bf16.msra.mxu1 %v4585_v47 }
 0x135   :  { %3803 = vmatprep.subr.bf16.mxu0 %v4478_v9  ;;  %3833 = vmatprep.subr.bf16.mxu1 %v4392_v38 }
 0x136   :  { %1060 = vmatprep.mubr.f32.mxu0 %v4391_v7  ;;  %3465 = vmatprep.mubr.msk.f32.mxu1 %vm4393_vm1, %v4391_v7 }
 0x138   :  { %3805 = vmatpush1.bf16.msra.mxu0 %v4500_v16  ;;  %3835 = vmatpush3.bf16.msra.mxu1 %v4613_v56 }
 0x139   :  { %3807 = vmatprep.subr.bf16.mxu0 %v4509_v21  ;;  %3836 = vmatprep.subr.bf16.mxu1 %v4392_v38 }
 0x13c   :  { %3809 = vmatpush1.bf16.msra.mxu0 %v4533_v29  ;;  %3838 = vmatpush3.bf16.msra.mxu1 %v4643_v1 }
 0x13d   :  { %3811 = vmatprep.subr.bf16.mxu0 %v4536_v31  ;;  %3839 = vmatprep.subr.bf16.mxu1 %v4392_v38 }
 0x140   :  { %3813 = vmatpush1.bf16.msra.mxu0 %v4556_v37  ;;  %3841 = vmatpush3.bf16.msra.mxu1 %v4665_v12  ;;  %v586_v37 = vld [vmem:[#allocation4 + $0x1] ss:$8 sm:$0x7] }
 0x141   :  { %3815 = vmatprep.subr.bf16.mxu0 %v4566_v41  ;;  %3842 = vmatprep.subr.bf16.mxu1 %v4392_v38  ;;  %v908_v30 = vrot.slane %v586_v37, 2 }
 0x144   :  { %3817 = vmatpush1.bf16.msra.mxu0 %v4588_v48  ;;  %3844 = vmatpush3.bf16.msra.mxu1 %v4679_v17 }
 0x145   :  { %3819 = vmatprep.subr.bf16.mxu0 %v4597_v51  ;;  %3845 = vmatprep.subr.bf16.mxu1 %v4392_v38 }
 0x148   :  { %3821 = vmatpush1.bf16.msra.mxu0 %v4618_v57  ;;  %3847 = vmatpush3.bf16.msra.mxu1 %v4694_v22 }
 0x149   :  { %3823 = vmatprep.subr.bf16.mxu0 %v4628_v60  ;;  %3848 = vmatprep.subr.bf16.mxu1 %v4392_v38  ;;  %v588_v60 = vld [vmem:[#allocation4 + $0x19] ss:$8 sm:$0x7] }
 0x14a   :  { %v838_v52 = vrot.slane %v588_v60, 1  ;;  %v909_v3 = vrot.slane %v588_v60, 2 }
 0x14c   :  { %3825 = vmatpush1.bf16.msra.mxu0 %v4646_v2  ;;  %3850 = vmatpush3.bf16.msra.mxu1 %v4707_v25 }
 0x14d   :  { %3827 = vmatprep.subr.bf16.mxu0 %v4656_v6  ;;  %3851 = vmatprep.subr.bf16.mxu1 %v4392_v38 }
 0x150   :  { %3829 = vmatpush1.bf16.msra.mxu0 %v4668_v13  ;;  %3853 = vmatpush3.bf16.msra.mxu1 %v4719_v28  ;;  %v837_v13 = vrot.slane %v586_v37, 1 }
 0x151   :  { %3886 = vmatprep.subr.bf16.mxu1 %v4392_v38 }
 0x206   :  { %v721_v8 = vpop.f32.mrb[2].mxu0  ;;  %v792_v9 = vpop.f32.mrb[8].mxu1 }
 0x207   :  { %v803_v16 = vrot.slane %v721_v8, %v4758_v63  ;;  %v723_v21 = vpop.f32.mrb[3].mxu0  ;;  %v3432_v29 = vpop.f32.mrb[9].mxu1  ;;  %v880_v4 = vadd.f32 %v4769_v43, %v792_v9 }
 0x208   :  { %v848_v31 = vrot.slane %v723_v21, %v4758_v63 }
 0x209   :  { %v804_v41 = vcombine.high %v803_v16, %v803_v16  ;;  %v811_v48 = vrot.slane %v803_v16, %v4758_v63  ;;  %v888_v10 = vrot.slane %v880_v4, %v4758_v63 }
 0x20a   :  { %v849_v51 = vcombine.high %v848_v31, %v848_v31  ;;  %v856_v57 = vrot.slane %v848_v31, %v4758_v63 }
 0x20b   :  { %v818_v2 = vrot.slane %v804_v41, %v4758_v63  ;;  %v821_v6 = vadd.f32 %v811_v48, %v586_v37  ;;  %v889_v19 = vcombine.high %v888_v10, %v888_v10  ;;  %v896_v24 = vrot.slane %v888_v10, %v4758_v63  ;;  %v1302_v10 = vld [vmem:[%s5525_s4 + $0xf8] sm:$0xff] }
 0x20c   :  { %v863_v25 = vrot.slane %v849_v51, %v4758_v63  ;;  %v866_v53 = vadd.f32 %v856_v57, %v837_v13  ;;  %v1277_v51 = vld [vmem:[%s5525_s4 + $0x30] sm:$0xff]  ;;  %v1280_v57 = vld [vmem:[%s5525_s4 + $0x48] sm:$0xff] }
 0x20d   :  { %v822_v28 = vadd.f32 %v818_v2, %v588_v60  ;;  %v3167_v50 = vmul.f32 -1.442695, %v821_v6  ;;  %v903_v32 = vrot.slane %v889_v19, %v4758_v63  ;;  %v4892_v60 = vpack.c.bf16 %v1280_v57, %v1277_v51  ;;  %v1284_v2 = vld [vmem:[%s5525_s4 + $0x68] sm:$0xff]  ;;  %v1287_v6 = vld [vmem:[%s5525_s4 + $0x80] sm:$0xff] }
 0x20e   :  { %v867_v55 = vadd.f32 %v863_v25, %v838_v52  ;;  %v3169_v58 = vmul.f32 -1.442695, %v866_v53  ;;  %v4902_v13 = vpack.c.bf16 %v1287_v6, %v1284_v2  ;;  %v1283_v25 = vld [vmem:[%s5525_s4 + $0x60] sm:$0xff]  ;;  %v1290_v52 = vld [vmem:[%s5525_s4 + $0x98] sm:$0xff]  ;;  %v1293_v53 = vld [vmem:[%s5525_s4 + $0xb0] sm:$0xff] }
 0x20f   :  { %4194 = vpow2.f32 %v3167_v50  ;;  %v3168_v54 = vmul.f32 -1.442695, %v822_v28  ;;  %v1286_v28 = vld [vmem:[%s5525_s4 + $0x78] sm:$0xff] }
 0x210   :  { %v3170_v59 = vmul.f32 -1.442695, %v867_v55  ;;  %v4910_v50 = vpack.c.bf16 %v1286_v28, %v1283_v25  ;;  %v1289_v55 = vld [vmem:[%s5525_s4 + $0x90] sm:$0xff] }
 0x211   :  { %4196 = vpow2.f32 %v3168_v54  ;;  %v4920_v54 = vpack.c.bf16 %v1293_v53, %v1290_v52  ;;  %v929_v57 = vld [vmem:[#allocation4 + $0x1a] ss:$8 sm:$0x7] }
 0x212   :  { %4198 = vpow2.f32 %v3169_v58  ;;  %v1292_v58 = vld [vmem:[%s5525_s4 + $0xa8] sm:$0xff] }
 0x213   :  { %4200 = vpow2.f32 %v3170_v59  ;;  %v4928_v59 = vpack.c.bf16 %v1292_v58, %v1289_v55  ;;  %v1179_v55 = vrot.slane %v929_v57, 1 }
 0x219   :  { %v4195_v61 = vpop.eup %4194 }
 0x21a   :  { %v829_v62 = vadd.f32 1.0, %v4195_v61  ;;  %v1296_v61 = vld [vmem:[%s5525_s4 + $0xc8] sm:$0xff] }
 0x21b   :  { %v4197_v0 = vpop.eup %4196 }
 0x21c   :  { %v830_v5 = vadd.f32 1.0, %v4197_v0  ;;  %4202 = vrcp.f32 %v829_v62  ;;  %v4199_v14 = vpop.eup %4198  ;;  %v1299_v62 = vld [vmem:[%s5525_s4 + $0xe0] sm:$0xff] }
 0x21d   :  { %v4201_v15 = vpop.eup %4200  ;;  %v874_v20 = vadd.f32 1.0, %v4199_v14  ;;  %v1295_v0 = vld [vmem:[%s5525_s4 + $0xc0] sm:$0xff]  ;;  %v4940_v4 = vpack.c.bf16 %v1299_v62, %v1296_v61  ;;  %v1305_v14 = vld [vmem:[%s5525_s4 + $0x110] sm:$0xff] }
 0x21e   :  { %4204 = vrcp.f32 %v830_v5  ;;  %v875_v26 = vadd.f32 1.0, %v4201_v15  ;;  %v1298_v5 = vld [vmem:[%s5525_s4 + $0xd8] sm:$0xff]  ;;  %v4955_v19 = vpack.c.bf16 %v1305_v14, %v1302_v10 }
 0x21f   :  { %4206 = vrcp.f32 %v874_v20  ;;  %v4952_v15 = vpack.c.bf16 %v1298_v5, %v1295_v0  ;;  %v1301_v20 = vld [vmem:[%s5525_s4 + $0xf0] sm:$0xff] }
 0x220   :  { %4208 = vrcp.f32 %v875_v26  ;;  %v1308_v26 = vld [vmem:[%s5525_s4 + $0x128] sm:$0xff] }
 0x226   :  { %v4203_v27 = vpop.eup %4202 }
 0x227   :  { %v906_v33 = vmul.f32 %v4203_v27, %v896_v24  ;;  %v1304_v24 = vld [vmem:[%s5525_s4 + $0x108] sm:$0xff]  ;;  %v1311_v27 = vld [vmem:[%s5525_s4 + $0x140] sm:$0xff] }
 0x228   :  { %v4205_v11 = vpop.eup %4204 }
 0x229   :  { %v907_v34 = vmul.f32 %v4205_v11, %v903_v32  ;;  %v912_v35 = vadd.f32 %v908_v30, %v906_v33  ;;  %v4207_v36 = vpop.eup %4206  ;;  %v1309_v30 = vld [vmem:[%s5525_s4 + $0x130] sm:$0xff]  ;;  %v1312_v32 = vld [vmem:[%s5525_s4 + $0x148] sm:$0xff]  ;;  %v4978_v11 = vpack.c.bf16 %v1304_v24, %v1301_v20 }
 0x22a   :  { %v4209_v39 = vpop.eup %4208  ;;  %v916_v40 = vsub.f32 1.0, %v4207_v36  ;;  %v920_v49 = vmul.f32 %v4207_v36, %v4779_v44  ;;  %v1278_v44 = vld [vmem:[%s5525_s4 + $0x38] sm:$0xff]  ;;  %v4975_v33 = vpack.c.bf16 %v1312_v32, %v1309_v30 }
 0x22b   :  { %v913_v23 = vadd.f32 %v909_v3, %v907_v34  ;;  %4210 = vtanh.f32 %v912_v35  ;;  %v917_v18 = vsub.f32 1.0, %v4209_v39  ;;  %v921_v16 = vmul.f32 %v4209_v39, %v4781_v45  ;;  %v1281_v45 = vld [vmem:[%s5525_s4 + $0x50] sm:$0xff]  ;;  %v1315_v3 = vld [vmem:[%s5525_s4 + $0x160] sm:$0xff]  ;;  %v1318_v34 = vld [vmem:[%s5525_s4 + $0x178] sm:$0xff] }
 0x22c   :  { %v4884_v48 = vpack.c.bf16 %v1281_v45, %v1278_v44  ;;  %v4987_v35 = vpack.c.bf16 %v1311_v27, %v1308_v26  ;;  %v1310_v36 = vld [vmem:[%s5525_s4 + $0x138] sm:$0xff]  ;;  %v4996_v39 = vpack.c.bf16 %v1318_v34, %v1315_v3 }
 0x22d   :  { %4212 = vtanh.f32 %v913_v23  ;;  %v1307_v23 = vld [vmem:[%s5525_s4 + $0x120] sm:$0xff] }
 0x235   :  { %v4211_v42 = vpop.eup %4210 }
 0x236   :  { %v918_v46 = vmul.f32 %v4211_v42, %v916_v40  ;;  %v1314_v40 = vld [vmem:[%s5525_s4 + $0x158] sm:$0xff]  ;;  %v1317_v42 = vld [vmem:[%s5525_s4 + $0x170] sm:$0xff] }
 0x237   :  { %v4213_v8 = vpop.eup %4212 }
 0x238   :  { %v919_v9 = vmul.f32 %v4213_v8, %v917_v18  ;;  %v4835_v21 = vadd.f32 %v920_v49, %v918_v46  ;;  %v5006_v18 = vpack.c.bf16 %v1310_v36, %v1307_v23  ;;  %v5009_v46 = vpack.c.bf16 %v1317_v42, %v1314_v40  ;;  %v1313_v49 = vld [vmem:[%s5525_s4 + $0x150] sm:$0xff]  ;;  %v1316_v8 = vld [vmem:[%s5525_s4 + $0x168] sm:$0xff] }
 0x23a   :  { %v4837_v29 = vadd.f32 %v921_v16, %v919_v9  ;;  %924 = vst [vmem:[#allocation3 + $0x1] sm:$0x1] %v4835_v21  ;;  %v5020_v9 = vpack.c.bf16 %v1316_v8, %v1313_v49 }
 0x23c   :  { %925 = vst [vmem:[#allocation3 + $0x9] sm:$0x1] %v4837_v29  ;;  %v980_v31 = vcombine.low %v4835_v21, %v4837_v29 }
 0x23e   :  { %v987_v37 = vrot.slane %v980_v31, %v4758_v63 }
 0x240   :  { %v994_v41 = vrot.slane %v987_v37, %v4758_v63 }
 0x242   :  { %1061 = vmatmul.mubr.f32.vlgmr.msra.gmra.mrb[4].mxu0 %v994_v41  ;;  %3466 = vmatmul.mubr.f32.vlgmr.msra.gmra.mrb[10].mxu1 %v994_v41 }
 0x243   :  { %3888 = vmatpush3.bf16.msra.mxu1 %v4585_v47  ;;  %1401 = vmatprep.mubr.f32.mxu0 %v4391_v7  ;;  %v1272_v47 = vld [vmem:[%s5525_s4 + $0x8] sm:$0xff] }
 0x244   :  { %3889 = vmatprep.subr.bf16.mxu1 %v4392_v38  ;;  %3500 = vmatprep.mubr.msk.f32.mxu1 %vm4393_vm1, %v4391_v7 }
 0x247   :  { %3891 = vmatpush3.bf16.msra.mxu1 %v4613_v56  ;;  %v1275_v56 = vld [vmem:[%s5525_s4 + $0x20] sm:$0xff] }
 0x248   :  { %3892 = vmatprep.subr.bf16.mxu1 %v4392_v38 }
 0x24b   :  { %3894 = vmatpush3.bf16.msra.mxu1 %v4643_v1  ;;  %v4866_v1 = vpack.c.bf16 %v1275_v56, %v1272_v47 }
 0x24c   :  { %3895 = vmatprep.subr.bf16.mxu1 %v4392_v38 }
 0x24d   :  { %3855 = vmatprep.subr.bf16.mxu0 %v4866_v1 }
 0x24f   :  { %3897 = vmatpush3.bf16.msra.mxu1 %v4665_v12  ;;  %v1271_v12 = vld [vmem:[%s5525_s4] sm:$0xff] }
 0x250   :  { %3898 = vmatprep.subr.bf16.mxu1 %v4392_v38 }
 0x253   :  { %3900 = vmatpush3.bf16.msra.mxu1 %v4679_v17  ;;  %v1274_v17 = vld [vmem:[%s5525_s4 + $0x18] sm:$0xff] }
 0x254   :  { %3901 = vmatprep.subr.bf16.mxu1 %v4392_v38 }
 0x257   :  { %3903 = vmatpush3.bf16.msra.mxu1 %v4694_v22  ;;  %v4874_v22 = vpack.c.bf16 %v1274_v17, %v1271_v12  ;;  %v927_v12 = vld [vmem:[#allocation4 + $0x2] ss:$8 sm:$0x7] }
 0x258   :  { %3904 = vmatprep.subr.bf16.mxu1 %v4392_v38  ;;  %v1178_v25 = vrot.slane %v927_v12, 1  ;;  %v1249_v42 = vrot.slane %v927_v12, 2 }
 0x259   :  { %3857 = vmatpush1.bf16.msra.mxu0 %v4874_v22 }
 0x25a   :  { %3859 = vmatprep.subr.bf16.mxu0 %v4884_v48 }
 0x25b   :  { %3906 = vmatpush3.bf16.msra.mxu1 %v4975_v33 }
 0x25c   :  { %3907 = vmatprep.subr.bf16.mxu1 %v4392_v38 }
 0x25d   :  { %3861 = vmatpush1.bf16.msra.mxu0 %v4892_v60 }
 0x25e   :  { %3863 = vmatprep.subr.bf16.mxu0 %v4902_v13 }
 0x25f   :  { %3909 = vmatpush3.bf16.msra.mxu1 %v4996_v39 }
 0x260   :  { %3942 = vmatprep.subr.bf16.mxu1 %v4392_v38 }
 0x261   :  { %3865 = vmatpush1.bf16.msra.mxu0 %v4910_v50 }
 0x262   :  { %3867 = vmatprep.subr.bf16.mxu0 %v4920_v54 }
 0x265   :  { %3869 = vmatpush1.bf16.msra.mxu0 %v4928_v59 }
 0x266   :  { %3871 = vmatprep.subr.bf16.mxu0 %v4940_v4 }
 0x269   :  { %3873 = vmatpush1.bf16.msra.mxu0 %v4952_v15 }
 0x26a   :  { %3875 = vmatprep.subr.bf16.mxu0 %v4955_v19 }
 0x26d   :  { %3877 = vmatpush1.bf16.msra.mxu0 %v4978_v11 }
 0x26e   :  { %3879 = vmatprep.subr.bf16.mxu0 %v4987_v35 }
 0x271   :  { %3881 = vmatpush1.bf16.msra.mxu0 %v5006_v18 }
 0x272   :  { %3883 = vmatprep.subr.bf16.mxu0 %v5009_v46 }
 0x275   :  { %3885 = vmatpush1.bf16.msra.mxu0 %v5020_v9 }
 0x276   :  { %3911 = vmatprep.subr.bf16.mxu0 %v4866_v1 }
 0x315   :  { %v1062_v16 = vpop.f32.mrb[4].mxu0  ;;  %v1133_v31 = vpop.f32.mrb[10].mxu1 }
 0x316   :  { %v1144_v37 = vrot.slane %v1062_v16, %v4758_v63  ;;  %v1064_v41 = vpop.f32.mrb[5].mxu0  ;;  %v3467_v47 = vpop.f32.mrb[11].mxu1  ;;  %v1221_v24 = vadd.f32 %v4769_v43, %v1133_v31  ;;  %v1250_v31 = vrot.slane %v929_v57, 2 }
 0x317   :  { %v1189_v56 = vrot.slane %v1064_v41, %v4758_v63 }
 0x318   :  { %v1145_v17 = vcombine.high %v1144_v37, %v1144_v37  ;;  %v1152_v44 = vrot.slane %v1144_v37, %v4758_v63  ;;  %v1229_v27 = vrot.slane %v1221_v24, %v4758_v63  ;;  %v1632_v24 = vld [vmem:[%s5525_s4 + $0xa0] sm:$0xff] }
 0x319   :  { %v1190_v45 = vcombine.high %v1189_v56, %v1189_v56  ;;  %v1197_v51 = vrot.slane %v1189_v56, %v4758_v63 }
 0x31a   :  { %v1159_v2 = vrot.slane %v1145_v17, %v4758_v63  ;;  %v1162_v6 = vadd.f32 %v1152_v44, %v927_v12  ;;  %v1230_v3 = vcombine.high %v1229_v27, %v1229_v27  ;;  %v1237_v23 = vrot.slane %v1229_v27, %v4758_v63  ;;  %v1638_v27 = vld [vmem:[%s5525_s4 + $0xd0] sm:$0xff] }
 0x31b   :  { %v1204_v28 = vrot.slane %v1190_v45, %v4758_v63  ;;  %v1207_v58 = vadd.f32 %v1197_v51, %v1178_v25 }
 0x31c   :  { %v1163_v52 = vadd.f32 %v1159_v2, %v929_v57  ;;  %v3171_v53 = vmul.f32 -1.442695, %v1162_v6  ;;  %v1244_v49 = vrot.slane %v1230_v3, %v4758_v63 }
 0x31d   :  { %v1208_v62 = vadd.f32 %v1204_v28, %v1179_v55  ;;  %v3173_v0 = vmul.f32 -1.442695, %v1207_v58 }
 0x31e   :  { %4214 = vpow2.f32 %v3171_v53  ;;  %v3172_v61 = vmul.f32 -1.442695, %v1163_v52 }
 0x31f   :  { %v3174_v5 = vmul.f32 -1.442695, %v1208_v62  ;;  %v1620_v62 = vld [vmem:[%s5525_s4 + $0x40] sm:$0xff] }
 0x320   :  { %4216 = vpow2.f32 %v3172_v61 }
 0x321   :  { %4218 = vpow2.f32 %v3173_v0  ;;  %v1623_v0 = vld [vmem:[%s5525_s4 + $0x58] sm:$0xff] }
 0x322   :  { %4220 = vpow2.f32 %v3174_v5  ;;  %v5082_v5 = vpack.c.bf16 %v1623_v0, %v1620_v62 }
 0x328   :  { %v4215_v10 = vpop.eup %4214 }
 0x329   :  { %v1170_v14 = vadd.f32 1.0, %v4215_v10  ;;  %v1626_v10 = vld [vmem:[%s5525_s4 + $0x70] sm:$0xff] }
 0x32a   :  { %v4217_v20 = vpop.eup %4216 }
 0x32b   :  { %v1171_v26 = vadd.f32 1.0, %v4217_v20  ;;  %4222 = vrcp.f32 %v1170_v14  ;;  %v4219_v30 = vpop.eup %4218  ;;  %v1629_v14 = vld [vmem:[%s5525_s4 + $0x88] sm:$0xff] }
 0x32c   :  { %v4221_v32 = vpop.eup %4220  ;;  %v1215_v34 = vadd.f32 1.0, %v4219_v30  ;;  %v5092_v20 = vpack.c.bf16 %v1629_v14, %v1626_v10 }
 0x32d   :  { %4224 = vrcp.f32 %v1171_v26  ;;  %v1216_v36 = vadd.f32 1.0, %v4221_v32  ;;  %v1635_v26 = vld [vmem:[%s5525_s4 + $0xb8] sm:$0xff]  ;;  %v1641_v32 = vld [vmem:[%s5525_s4 + $0xe8] sm:$0xff] }
 0x32e   :  { %4226 = vrcp.f32 %v1215_v34  ;;  %v5105_v30 = vpack.c.bf16 %v1635_v26, %v1632_v24  ;;  %v5111_v3 = vpack.c.bf16 %v1641_v32, %v1638_v27  ;;  %v1644_v34 = vld [vmem:[%s5525_s4 + $0x100] sm:$0xff] }
 0x32f   :  { %4228 = vrcp.f32 %v1216_v36 }
 0x335   :  { %v4223_v40 = vpop.eup %4222 }
 0x336   :  { %v1247_v8 = vmul.f32 %v4223_v40, %v1237_v23  ;;  %v1647_v23 = vld [vmem:[%s5525_s4 + $0x118] sm:$0xff] }
 0x337   :  { %v4225_v16 = vpop.eup %4224  ;;  %v5121_v36 = vpack.c.bf16 %v1647_v23, %v1644_v34 }
 0x338   :  { %v1248_v37 = vmul.f32 %v4225_v16, %v1244_v49  ;;  %v1253_v41 = vadd.f32 %v1249_v42, %v1247_v8  ;;  %v4227_v56 = vpop.eup %4226 }
 0x339   :  { %v4229_v17 = vpop.eup %4228  ;;  %v1257_v44 = vsub.f32 1.0, %v4227_v56  ;;  %v1261_v12 = vmul.f32 %v4227_v56, %v4835_v21  ;;  %v1614_v21 = vld [vmem:[%s5525_s4 + $0x10] sm:$0xff] }
 0x33a   :  { %v1254_v47 = vadd.f32 %v1250_v31, %v1248_v37  ;;  %4230 = vtanh.f32 %v1253_v41  ;;  %v1258_v51 = vsub.f32 1.0, %v4229_v17  ;;  %v1262_v28 = vmul.f32 %v4229_v17, %v4837_v29  ;;  %v1617_v29 = vld [vmem:[%s5525_s4 + $0x28] sm:$0xff]  ;;  %v1268_v37 = vld [vmem:[#allocation4 + $0x3] ss:$8 sm:$0x7] }
 0x33b   :  { %v5072_v61 = vpack.c.bf16 %v1617_v29, %v1614_v21 }
 0x33c   :  { %4232 = vtanh.f32 %v1254_v47 }
 0x344   :  { %v4231_v45 = vpop.eup %4230 }
 0x345   :  { %v1259_v2 = vmul.f32 %v4231_v45, %v1257_v44  ;;  %v1270_v44 = vld [vmem:[#allocation4 + $0x1b] ss:$8 sm:$0x7] }
 0x346   :  { %v4233_v6 = vpop.eup %4232 }
 0x347   :  { %v1260_v25 = vmul.f32 %v4233_v6, %v1258_v51  ;;  %v5037_v52 = vadd.f32 %v1261_v12, %v1259_v2  ;;  %v1519_v2 = vrot.slane %v1268_v37, 1 }
 0x349   :  { %v5039_v57 = vadd.f32 %v1262_v28, %v1260_v25  ;;  %1265 = vst [vmem:[#allocation3 + $0x2] sm:$0x1] %v5037_v52  ;;  %v1520_v28 = vrot.slane %v1270_v44, 1 }
 0x34b   :  { %1266 = vst [vmem:[#allocation3 + $0xa] sm:$0x1] %v5039_v57  ;;  %v1321_v53 = vcombine.low %v5037_v52, %v5039_v57 }
 0x34d   :  { %v1328_v55 = vrot.slane %v1321_v53, %v4758_v63 }
 0x34f   :  { %v1335_v58 = vrot.slane %v1328_v55, %v4758_v63 }
 0x351   :  { %1402 = vmatmul.mubr.f32.vlgmr.msra.gmra.mrb[6].mxu0 %v1335_v58  ;;  %3501 = vmatmul.mubr.f32.vlgmr.msra.gmra.mrb[12].mxu1 %v1335_v58 }
 0x352   :  { %3913 = vmatpush1.bf16.msra.mxu0 %v4874_v22  ;;  %1742 = vmatprep.mubr.f32.mxu0 %v4391_v7 }
 0x353   :  { %3915 = vmatprep.subr.bf16.mxu0 %v4884_v48  ;;  %3535 = vmatprep.mubr.msk.f32.mxu1 %vm4393_vm1, %v4391_v7 }
 0x354   :  { %3944 = vmatpush3.bf16.msra.mxu1 %v5072_v61 }
 0x355   :  { %3945 = vmatprep.subr.bf16.mxu1 %v4392_v38 }
 0x356   :  { %3917 = vmatpush1.bf16.msra.mxu0 %v4892_v60 }
 0x357   :  { %3919 = vmatprep.subr.bf16.mxu0 %v4902_v13 }
 0x358   :  { %3947 = vmatpush3.bf16.msra.mxu1 %v5082_v5 }
 0x359   :  { %3948 = vmatprep.subr.bf16.mxu1 %v4392_v38 }
 0x35a   :  { %3921 = vmatpush1.bf16.msra.mxu0 %v4910_v50 }
 0x35b   :  { %3923 = vmatprep.subr.bf16.mxu0 %v4920_v54 }
 0x35c   :  { %3950 = vmatpush3.bf16.msra.mxu1 %v5092_v20 }
 0x35d   :  { %3951 = vmatprep.subr.bf16.mxu1 %v4392_v38 }
 0x35e   :  { %3925 = vmatpush1.bf16.msra.mxu0 %v4928_v59 }
 0x35f   :  { %3927 = vmatprep.subr.bf16.mxu0 %v4940_v4 }
 0x360   :  { %3953 = vmatpush3.bf16.msra.mxu1 %v5105_v30 }
 0x361   :  { %3954 = vmatprep.subr.bf16.mxu1 %v4392_v38 }
 0x362   :  { %3929 = vmatpush1.bf16.msra.mxu0 %v4952_v15 }
 0x363   :  { %3931 = vmatprep.subr.bf16.mxu0 %v4955_v19 }
 0x364   :  { %3956 = vmatpush3.bf16.msra.mxu1 %v5111_v3 }
 0x365   :  { %3957 = vmatprep.subr.bf16.mxu1 %v4392_v38 }
 0x366   :  { %3933 = vmatpush1.bf16.msra.mxu0 %v4978_v11 }
 0x367   :  { %3935 = vmatprep.subr.bf16.mxu0 %v4987_v35 }
 0x368   :  { %3959 = vmatpush3.bf16.msra.mxu1 %v5121_v36 }
 0x369   :  { %3960 = vmatprep.subr.bf16.mxu1 %v4392_v38 }
 0x36a   :  { %3937 = vmatpush1.bf16.msra.mxu0 %v5006_v18 }
 0x36b   :  { %3939 = vmatprep.subr.bf16.mxu0 %v5009_v46 }
 0x36c   :  { %3962 = vmatpush3.bf16.msra.mxu1 %v4975_v33 }
 0x36d   :  { %3963 = vmatprep.subr.bf16.mxu1 %v4392_v38 }
 0x36e   :  { %3941 = vmatpush1.bf16.msra.mxu0 %v5020_v9 }
 0x36f   :  { %3967 = vmatprep.subr.bf16.mxu0 %v4866_v1 }
 0x370   :  { %3965 = vmatpush3.bf16.msra.mxu1 %v4996_v39 }
 0x371   :  { %3998 = vmatprep.subr.bf16.mxu1 %v4392_v38 }
 0x424   :  { %v1403_v40 = vpop.f32.mrb[6].mxu0  ;;  %v1474_v42 = vpop.f32.mrb[12].mxu1 }
 0x425   :  { %v1485_v49 = vrot.slane %v1403_v40, %v4758_v63  ;;  %v1405_v8 = vpop.f32.mrb[7].mxu0  ;;  %v3502_v16 = vpop.f32.mrb[13].mxu1  ;;  %v1562_v14 = vadd.f32 %v4769_v43, %v1474_v42  ;;  %v1591_v43 = vrot.slane %v1270_v44, 2 }
 0x426   :  { %v1530_v31 = vrot.slane %v1405_v8, %v4758_v63  ;;  %v1590_v16 = vrot.slane %v1268_v37, 2 }
 0x427   :  { %v1486_v41 = vcombine.high %v1485_v49, %v1485_v49  ;;  %v1493_v47 = vrot.slane %v1485_v49, %v4758_v63  ;;  %v1570_v26 = vrot.slane %v1562_v14, %v4758_v63 }
 0x428   :  { %v1531_v56 = vcombine.high %v1530_v31, %v1530_v31  ;;  %v1538_v17 = vrot.slane %v1530_v31, %v4758_v63 }
 0x429   :  { %v1500_v45 = vrot.slane %v1486_v41, %v4758_v63  ;;  %v1503_v51 = vadd.f32 %v1493_v47, %v1268_v37  ;;  %v1571_v34 = vcombine.high %v1570_v26, %v1570_v26  ;;  %v1578_v40 = vrot.slane %v1570_v26, %v4758_v63  ;;  %v1609_v26 = vld [vmem:[#allocation4 + $0x4] ss:$8 sm:$0x7] }
 0x42a   :  { %v1545_v12 = vrot.slane %v1531_v56, %v4758_v63  ;;  %v1548_v53 = vadd.f32 %v1538_v17, %v1519_v2 }
 0x42b   :  { %v1504_v6 = vadd.f32 %v1500_v45, %v1270_v44  ;;  %v3175_v25 = vmul.f32 -1.442695, %v1503_v51  ;;  %v1585_v31 = vrot.slane %v1571_v34, %v4758_v63 }
 0x42c   :  { %v1549_v58 = vadd.f32 %v1545_v12, %v1520_v28  ;;  %v3177_v21 = vmul.f32 -1.442695, %v1548_v53 }
 0x42d   :  { %4234 = vpow2.f32 %v3175_v25  ;;  %v3176_v55 = vmul.f32 -1.442695, %v1504_v6 }
 0x42e   :  { %v3178_v29 = vmul.f32 -1.442695, %v1549_v58 }
 0x42f   :  { %4236 = vpow2.f32 %v3176_v55 }
 0x430   :  { %4238 = vpow2.f32 %v3177_v21 }
 0x431   :  { %4240 = vpow2.f32 %v3178_v29 }
 0x437   :  { %v4235_v62 = vpop.eup %4234 }
 0x438   :  { %v1511_v0 = vadd.f32 1.0, %v4235_v62 }
 0x439   :  { %v4237_v10 = vpop.eup %4236 }
 0x43a   :  { %v1512_v24 = vadd.f32 1.0, %v4237_v10  ;;  %4242 = vrcp.f32 %v1511_v0  ;;  %v4239_v27 = vpop.eup %4238 }
 0x43b   :  { %v4241_v32 = vpop.eup %4240  ;;  %v1556_v23 = vadd.f32 1.0, %v4239_v27 }
 0x43c   :  { %4244 = vrcp.f32 %v1512_v24  ;;  %v1557_v49 = vadd.f32 1.0, %v4241_v32 }
 0x43d   :  { %4246 = vrcp.f32 %v1556_v23 }
 0x43e   :  { %4248 = vrcp.f32 %v1557_v49 }
 0x444   :  { %v4243_v8 = vpop.eup %4242 }
 0x445   :  { %v1588_v41 = vmul.f32 %v4243_v8, %v1578_v40  ;;  %v1611_v40 = vld [vmem:[#allocation4 + $0x1c] ss:$8 sm:$0x7]  ;;  %v1860_v8 = vrot.slane %v1609_v26, 1 }
 0x446   :  { %v4245_v47 = vpop.eup %4244 }
 0x447   :  { %v1589_v42 = vmul.f32 %v4245_v47, %v1585_v31  ;;  %v1594_v56 = vadd.f32 %v1590_v16, %v1588_v41  ;;  %v4247_v45 = vpop.eup %4246  ;;  %v1861_v47 = vrot.slane %v1611_v40, 1 }
 0x448   :  { %v4249_v51 = vpop.eup %4248  ;;  %v1598_v2 = vsub.f32 1.0, %v4247_v45  ;;  %v1602_v37 = vmul.f32 %v4247_v45, %v5037_v52 }
 0x449   :  { %v1595_v17 = vadd.f32 %v1591_v43, %v1589_v42  ;;  %4250 = vtanh.f32 %v1594_v56  ;;  %v1599_v6 = vsub.f32 1.0, %v4249_v51  ;;  %v1603_v55 = vmul.f32 %v4249_v51, %v5039_v57 }
 0x44b   :  { %4252 = vtanh.f32 %v1595_v17 }
 0x453   :  { %v4251_v12 = vpop.eup %4250 }
 0x454   :  { %v1600_v25 = vmul.f32 %v4251_v12, %v1598_v2 }
 0x455   :  { %v4253_v28 = vpop.eup %4252 }
 0x456   :  { %v1601_v53 = vmul.f32 %v4253_v28, %v1599_v6  ;;  %v5142_v58 = vadd.f32 %v1602_v37, %v1600_v25  ;;  %v5196_v6 = vld [vmem:[%s5526_s5] ss:$0 sm:$0xff] }
 0x458   :  { %v5144_v44 = vadd.f32 %v1603_v55, %v1601_v53  ;;  %1606 = vst [vmem:[#allocation3 + $0x3] sm:$0x1] %v5142_v58 }
 0x45a   :  { %1607 = vst [vmem:[#allocation3 + $0xb] sm:$0x1] %v5144_v44  ;;  %v1662_v21 = vcombine.low %v5142_v58, %v5144_v44 }
 0x45c   :  { %v1669_v29 = vrot.slane %v1662_v21, %v4758_v63 }
 0x45e   :  { %v1676_v62 = vrot.slane %v1669_v29, %v4758_v63 }
 0x460   :  { %1743 = vmatmul.mubr.f32.vlgmr.msra.gmra.mrb[8].mxu0 %v1676_v62  ;;  %3536 = vmatmul.mubr.f32.vlgmr.msra.gmra.mrb[14].mxu1 %v1676_v62 }
 0x461   :  { %3969 = vmatpush1.bf16.msra.mxu0 %v4874_v22  ;;  %4000 = vmatpush3.bf16.msra.mxu1 %v5072_v61 }
 0x462   :  { %3971 = vmatprep.subr.bf16.mxu0 %v4884_v48  ;;  %4001 = vmatprep.subr.bf16.mxu1 %v4392_v38 }
 0x463   :  { %2083 = vmatprep.mubr.f32.mxu0 %v4391_v7  ;;  %3570 = vmatprep.mubr.msk.f32.mxu1 %vm4393_vm1, %v4391_v7 }
 0x465   :  { %3973 = vmatpush1.bf16.msra.mxu0 %v4892_v60  ;;  %4003 = vmatpush3.bf16.msra.mxu1 %v5082_v5 }
 0x466   :  { %3975 = vmatprep.subr.bf16.mxu0 %v4902_v13  ;;  %4004 = vmatprep.subr.bf16.mxu1 %v4392_v38 }
 0x469   :  { %3977 = vmatpush1.bf16.msra.mxu0 %v4910_v50  ;;  %4006 = vmatpush3.bf16.msra.mxu1 %v5092_v20 }
 0x46a   :  { %3979 = vmatprep.subr.bf16.mxu0 %v4920_v54  ;;  %4007 = vmatprep.subr.bf16.mxu1 %v4392_v38 }
 0x46d   :  { %3981 = vmatpush1.bf16.msra.mxu0 %v4928_v59  ;;  %4009 = vmatpush3.bf16.msra.mxu1 %v5105_v30 }
 0x46e   :  { %3983 = vmatprep.subr.bf16.mxu0 %v4940_v4  ;;  %4010 = vmatprep.subr.bf16.mxu1 %v4392_v38 }
 0x471   :  { %3985 = vmatpush1.bf16.msra.mxu0 %v4952_v15  ;;  %4012 = vmatpush3.bf16.msra.mxu1 %v5111_v3 }
 0x472   :  { %3987 = vmatprep.subr.bf16.mxu0 %v4955_v19  ;;  %4013 = vmatprep.subr.bf16.mxu1 %v4392_v38 }
 0x475   :  { %3989 = vmatpush1.bf16.msra.mxu0 %v4978_v11  ;;  %4015 = vmatpush3.bf16.msra.mxu1 %v5121_v36 }
 0x476   :  { %3991 = vmatprep.subr.bf16.mxu0 %v4987_v35  ;;  %4016 = vmatprep.subr.bf16.mxu1 %v4392_v38 }
 0x479   :  { %3993 = vmatpush1.bf16.msra.mxu0 %v5006_v18  ;;  %4018 = vmatpush3.bf16.msra.mxu1 %v4975_v33 }
 0x47a   :  { %3995 = vmatprep.subr.bf16.mxu0 %v5009_v46  ;;  %4019 = vmatprep.subr.bf16.mxu1 %v4392_v38 }
 0x47d   :  { %3997 = vmatpush1.bf16.msra.mxu0 %v5020_v9  ;;  %4021 = vmatpush3.bf16.msra.mxu1 %v4996_v39 }
 0x47e   :  { %4023 = vmatprep.subr.bf16.mxu0 %v4866_v1  ;;  %4054 = vmatprep.subr.bf16.mxu1 %v4392_v38 }
 0x533   :  { %v1744_v52 = vpop.f32.mrb[8].mxu0  ;;  %v1815_v57 = vpop.f32.mrb[14].mxu1 }
 0x534   :  { %v1826_v0 = vrot.slane %v1744_v52, %v4758_v63  ;;  %v1746_v10 = vpop.f32.mrb[9].mxu0  ;;  %v3537_v14 = vpop.f32.mrb[15].mxu1  ;;  %v1903_v25 = vadd.f32 %v5196_v6, %v1815_v57  ;;  %v1932_v57 = vrot.slane %v1611_v40, 2 }
 0x535   :  { %v1871_v24 = vrot.slane %v1746_v10, %v4758_v63  ;;  %v1931_v10 = vrot.slane %v1609_v26, 2 }
 0x536   :  { %v1827_v27 = vcombine.high %v1826_v0, %v1826_v0  ;;  %v1834_v32 = vrot.slane %v1826_v0, %v4758_v63  ;;  %v1911_v28 = vrot.slane %v1903_v25, %v4758_v63 }
 0x537   :  { %v1872_v34 = vcombine.high %v1871_v24, %v1871_v24  ;;  %v1879_v23 = vrot.slane %v1871_v24, %v4758_v63 }
 0x538   :  { %v1841_v1 = vrot.slane %v1827_v27, %v4758_v63  ;;  %v1844_v49 = vadd.f32 %v1834_v32, %v1609_v26  ;;  %v1912_v21 = vcombine.high %v1911_v28, %v1911_v28  ;;  %v1919_v62 = vrot.slane %v1911_v28, %v4758_v63 }
 0x539   :  { %v1886_v16 = vrot.slane %v1872_v34, %v4758_v63  ;;  %v1889_v43 = vadd.f32 %v1879_v23, %v1860_v8 }
 0x53a   :  { %v1845_v31 = vadd.f32 %v1841_v1, %v1611_v40  ;;  %v3179_v41 = vmul.f32 -1.442695, %v1844_v49  ;;  %v1926_v14 = vrot.slane %v1912_v21, %v4758_v63 }
 0x53b   :  { %v1890_v56 = vadd.f32 %v1886_v16, %v1861_v47  ;;  %v3181_v17 = vmul.f32 -1.442695, %v1889_v43 }
 0x53c   :  { %4254 = vpow2.f32 %v3179_v41  ;;  %v3180_v42 = vmul.f32 -1.442695, %v1845_v31 }
 0x53d   :  { %v3182_v45 = vmul.f32 -1.442695, %v1890_v56 }
 0x53e   :  { %4256 = vpow2.f32 %v3180_v42 }
 0x53f   :  { %4258 = vpow2.f32 %v3181_v17 }
 0x540   :  { %4260 = vpow2.f32 %v3182_v45 }
 0x546   :  { %v4255_v51 = vpop.eup %4254 }
 0x547   :  { %v1852_v2 = vadd.f32 1.0, %v4255_v51 }
 0x548   :  { %v4257_v12 = vpop.eup %4256 }
 0x549   :  { %v1853_v37 = vadd.f32 1.0, %v4257_v12  ;;  %4262 = vrcp.f32 %v1852_v2  ;;  %v4259_v53 = vpop.eup %4258 }
 0x54a   :  { %v4261_v55 = vpop.eup %4260  ;;  %v1897_v29 = vadd.f32 1.0, %v4259_v53 }
 0x54b   :  { %4264 = vrcp.f32 %v1853_v37  ;;  %v1898_v52 = vadd.f32 1.0, %v4261_v55 }
 0x54c   :  { %4266 = vrcp.f32 %v1897_v29 }
 0x54d   :  { %4268 = vrcp.f32 %v1898_v52 }
 0x553   :  { %v4263_v0 = vpop.eup %4262 }
 0x554   :  { %v1929_v24 = vmul.f32 %v4263_v0, %v1919_v62 }
 0x555   :  { %v4265_v27 = vpop.eup %4264 }
 0x556   :  { %v1930_v32 = vmul.f32 %v4265_v27, %v1926_v14  ;;  %v1935_v34 = vadd.f32 %v1931_v10, %v1929_v24  ;;  %v4267_v1 = vpop.eup %4266 }
 0x557   :  { %v4269_v49 = vpop.eup %4268  ;;  %v1939_v8 = vsub.f32 1.0, %v4267_v1  ;;  %v1943_v26 = vmul.f32 %v4267_v1, %v5142_v58 }
 0x558   :  { %v1936_v23 = vadd.f32 %v1932_v57, %v1930_v32  ;;  %4270 = vtanh.f32 %v1935_v34  ;;  %v1940_v31 = vsub.f32 1.0, %v4269_v49  ;;  %v1944_v42 = vmul.f32 %v4269_v49, %v5144_v44 }
 0x55a   :  { %4272 = vtanh.f32 %v1936_v23 }
 0x562   :  { %v4271_v16 = vpop.eup %4270 }
 0x563   :  { %v1941_v41 = vmul.f32 %v4271_v16, %v1939_v8 }
 0x564   :  { %v4273_v47 = vpop.eup %4272 }
 0x565   :  { %v1942_v43 = vmul.f32 %v4273_v47, %v1940_v31  ;;  %v5204_v56 = vadd.f32 %v1943_v26, %v1941_v41 }
 0x567   :  { %v5206_v40 = vadd.f32 %v1944_v42, %v1942_v43  ;;  %1947 = vst [vmem:[#allocation3 + $0x4] sm:$0x1] %v5204_v56 }
 0x569   :  { %1948 = vst [vmem:[#allocation3 + $0xc] sm:$0x1] %v5206_v40  ;;  %v2003_v17 = vcombine.low %v5204_v56, %v5206_v40 }
 0x56b   :  { %v2010_v45 = vrot.slane %v2003_v17, %v4758_v63 }
 0x56d   :  { %v2017_v51 = vrot.slane %v2010_v45, %v4758_v63 }
 0x56f   :  { %2084 = vmatmul.mubr.f32.vlgmr.msra.gmra.mrb[10].mxu0 %v2017_v51  ;;  %3571 = vmatmul.mubr.f32.vlgmr.msra.gmra.mrb[16].mxu1 %v2017_v51 }
 0x570   :  { %4025 = vmatpush1.bf16.msra.mxu0 %v4874_v22  ;;  %4056 = vmatpush3.bf16.msra.mxu1 %v5072_v61 }
 0x571   :  { %4027 = vmatprep.subr.bf16.mxu0 %v4884_v48  ;;  %4057 = vmatprep.subr.bf16.mxu1 %v4392_v38 }
 0x572   :  { %2424 = vmatprep.mubr.f32.mxu0 %v4391_v7  ;;  %3605 = vmatprep.mubr.msk.f32.mxu1 %vm4393_vm1, %v4391_v7 }
 0x574   :  { %4029 = vmatpush1.bf16.msra.mxu0 %v4892_v60  ;;  %4059 = vmatpush3.bf16.msra.mxu1 %v5082_v5 }
 0x575   :  { %4031 = vmatprep.subr.bf16.mxu0 %v4902_v13  ;;  %4060 = vmatprep.subr.bf16.mxu1 %v4392_v38 }
 0x578   :  { %4033 = vmatpush1.bf16.msra.mxu0 %v4910_v50  ;;  %4062 = vmatpush3.bf16.msra.mxu1 %v5092_v20 }
 0x579   :  { %4035 = vmatprep.subr.bf16.mxu0 %v4920_v54  ;;  %4063 = vmatprep.subr.bf16.mxu1 %v4392_v38 }
 0x57c   :  { %4037 = vmatpush1.bf16.msra.mxu0 %v4928_v59  ;;  %4065 = vmatpush3.bf16.msra.mxu1 %v5105_v30  ;;  %v1950_v59 = vld [vmem:[#allocation4 + $0x5] ss:$8 sm:$0x7] }
 0x57d   :  { %4039 = vmatprep.subr.bf16.mxu0 %v4940_v4  ;;  %4066 = vmatprep.subr.bf16.mxu1 %v4392_v38  ;;  %v2272_v34 = vrot.slane %v1950_v59, 2 }
 0x580   :  { %4041 = vmatpush1.bf16.msra.mxu0 %v4952_v15  ;;  %4068 = vmatpush3.bf16.msra.mxu1 %v5111_v3 }
 0x581   :  { %4043 = vmatprep.subr.bf16.mxu0 %v4955_v19  ;;  %4069 = vmatprep.subr.bf16.mxu1 %v4392_v38 }
 0x584   :  { %4045 = vmatpush1.bf16.msra.mxu0 %v4978_v11  ;;  %4071 = vmatpush3.bf16.msra.mxu1 %v5121_v36  ;;  %v1952_v11 = vld [vmem:[#allocation4 + $0x1d] ss:$8 sm:$0x7] }
 0x585   :  { %4047 = vmatprep.subr.bf16.mxu0 %v4987_v35  ;;  %4072 = vmatprep.subr.bf16.mxu1 %v4392_v38  ;;  %v2202_v44 = vrot.slane %v1952_v11, 1  ;;  %v2273_v8 = vrot.slane %v1952_v11, 2 }
 0x588   :  { %4049 = vmatpush1.bf16.msra.mxu0 %v5006_v18  ;;  %4074 = vmatpush3.bf16.msra.mxu1 %v4975_v33  ;;  %v2201_v18 = vrot.slane %v1950_v59, 1 }
 0x589   :  { %4051 = vmatprep.subr.bf16.mxu0 %v5009_v46  ;;  %4075 = vmatprep.subr.bf16.mxu1 %v4392_v38 }
 0x58c   :  { %4053 = vmatpush1.bf16.msra.mxu0 %v5020_v9  ;;  %4077 = vmatpush3.bf16.msra.mxu1 %v4996_v39 }
 0x58d   :  { %4110 = vmatprep.subr.bf16.mxu1 %v4392_v38 }
 0x642   :  { %v2085_v22 = vpop.f32.mrb[10].mxu0  ;;  %v2156_v48 = vpop.f32.mrb[16].mxu1 }
 0x643   :  { %v2167_v60 = vrot.slane %v2085_v22, %v4758_v63  ;;  %v2087_v13 = vpop.f32.mrb[11].mxu0  ;;  %v3572_v50 = vpop.f32.mrb[17].mxu1  ;;  %v2244_v29 = vadd.f32 %v5196_v6, %v2156_v48 }
 0x644   :  { %v2212_v54 = vrot.slane %v2087_v13, %v4758_v63 }
 0x645   :  { %v2168_v4 = vcombine.high %v2167_v60, %v2167_v60  ;;  %v2175_v15 = vrot.slane %v2167_v60, %v4758_v63  ;;  %v2252_v52 = vrot.slane %v2244_v29, %v4758_v63  ;;  %v2662_v29 = vld [vmem:[%s5525_s4 + $0xd8] sm:$0xff] }
 0x646   :  { %v2213_v19 = vcombine.high %v2212_v54, %v2212_v54  ;;  %v2220_v33 = vrot.slane %v2212_v54, %v4758_v63 }
 0x647   :  { %v2182_v35 = vrot.slane %v2168_v4, %v4758_v63  ;;  %v2185_v39 = vadd.f32 %v2175_v15, %v1950_v59  ;;  %v2253_v14 = vcombine.high %v2252_v52, %v2252_v52  ;;  %v2260_v27 = vrot.slane %v2252_v52, %v4758_v63  ;;  %v2641_v15 = vld [vmem:[%s5525_s4 + $0x30] sm:$0xff]  ;;  %v2666_v52 = vld [vmem:[%s5525_s4 + $0xf8] sm:$0xff] }
 0x648   :  { %v2227_v46 = vrot.slane %v2213_v19, %v4758_v63  ;;  %v2230_v2 = vadd.f32 %v2220_v33, %v2201_v18  ;;  %v2644_v19 = vld [vmem:[%s5525_s4 + $0x48] sm:$0xff] }
 0x649   :  { %v2186_v9 = vadd.f32 %v2182_v35, %v1952_v11  ;;  %v3183_v58 = vmul.f32 -1.442695, %v2185_v39  ;;  %v2267_v23 = vrot.slane %v2253_v14, %v4758_v63  ;;  %v4084_v33 = vpack.c.bf16 %v2644_v19, %v2641_v15  ;;  %v2648_v11 = vld [vmem:[%s5525_s4 + $0x68] sm:$0xff]  ;;  %v2651_v35 = vld [vmem:[%s5525_s4 + $0x80] sm:$0xff] }
 0x64a   :  { %v2231_v25 = vadd.f32 %v2227_v46, %v2202_v44  ;;  %v3185_v37 = vmul.f32 -1.442695, %v2230_v2  ;;  %v2647_v39 = vld [vmem:[%s5525_s4 + $0x60] sm:$0xff]  ;;  %v4086_v18 = vpack.c.bf16 %v2651_v35, %v2648_v11  ;;  %v2650_v46 = vld [vmem:[%s5525_s4 + $0x78] sm:$0xff] }
 0x64b   :  { %4274 = vpow2.f32 %v3183_v58  ;;  %v3184_v12 = vmul.f32 -1.442695, %v2186_v9  ;;  %v2654_v9 = vld [vmem:[%s5525_s4 + $0x98] sm:$0xff]  ;;  %v2657_v58 = vld [vmem:[%s5525_s4 + $0xb0] sm:$0xff]  ;;  %v4088_v44 = vpack.c.bf16 %v2650_v46, %v2647_v39 }
 0x64c   :  { %v3186_v28 = vmul.f32 -1.442695, %v2231_v25  ;;  %v4090_v2 = vpack.c.bf16 %v2657_v58, %v2654_v9  ;;  %v2656_v25 = vld [vmem:[%s5525_s4 + $0xa8] sm:$0xff] }
 0x64d   :  { %4276 = vpow2.f32 %v3184_v12  ;;  %v2653_v12 = vld [vmem:[%s5525_s4 + $0x90] sm:$0xff] }
 0x64e   :  { %4278 = vpow2.f32 %v3185_v37  ;;  %v2660_v37 = vld [vmem:[%s5525_s4 + $0xc8] sm:$0xff] }
 0x64f   :  { %4280 = vpow2.f32 %v3186_v28  ;;  %v2663_v28 = vld [vmem:[%s5525_s4 + $0xe0] sm:$0xff] }
 0x655   :  { %v4275_v53 = vpop.eup %4274 }
 0x656   :  { %v2193_v55 = vadd.f32 1.0, %v4275_v53  ;;  %v4092_v53 = vpack.c.bf16 %v2656_v25, %v2653_v12 }
 0x657   :  { %v4277_v21 = vpop.eup %4276 }
 0x658   :  { %v2194_v62 = vadd.f32 1.0, %v4277_v21  ;;  %4282 = vrcp.f32 %v2193_v55  ;;  %v4279_v0 = vpop.eup %4278  ;;  %v4094_v55 = vpack.c.bf16 %v2663_v28, %v2660_v37  ;;  %v2659_v21 = vld [vmem:[%s5525_s4 + $0xc0] sm:$0xff] }
 0x659   :  { %v4281_v10 = vpop.eup %4280  ;;  %v2238_v24 = vadd.f32 1.0, %v4279_v0  ;;  %v2669_v0 = vld [vmem:[%s5525_s4 + $0x110] sm:$0xff] }
 0x65a   :  { %4284 = vrcp.f32 %v2194_v62  ;;  %v2239_v57 = vadd.f32 1.0, %v4281_v10  ;;  %v2673_v62 = vld [vmem:[%s5525_s4 + $0x130] sm:$0xff]  ;;  %v2676_v10 = vld [vmem:[%s5525_s4 + $0x148] sm:$0xff] }
 0x65b   :  { %4286 = vrcp.f32 %v2238_v24  ;;  %v4129_v14 = vpack.c.bf16 %v2676_v10, %v2673_v62  ;;  %v2679_v24 = vld [vmem:[%s5525_s4 + $0x160] sm:$0xff] }
 0x65c   :  { %4288 = vrcp.f32 %v2239_v57  ;;  %v2682_v57 = vld [vmem:[%s5525_s4 + $0x178] sm:$0xff] }
 0x662   :  { %v4283_v32 = vpop.eup %4282 }
 0x663   :  { %v2270_v1 = vmul.f32 %v4283_v32, %v2260_v27  ;;  %v4096_v27 = vpack.c.bf16 %v2662_v29, %v2659_v21  ;;  %v4098_v32 = vpack.c.bf16 %v2669_v0, %v2666_v52 }
 0x664   :  { %v4285_v49 = vpop.eup %4284 }
 0x665   :  { %v2271_v16 = vmul.f32 %v4285_v49, %v2267_v23  ;;  %v2276_v31 = vadd.f32 %v2272_v34, %v2270_v1  ;;  %v4287_v26 = vpop.eup %4286  ;;  %v2665_v34 = vld [vmem:[%s5525_s4 + $0xf0] sm:$0xff]  ;;  %v2668_v23 = vld [vmem:[%s5525_s4 + $0x108] sm:$0xff]  ;;  %v4132_v1 = vpack.c.bf16 %v2682_v57, %v2679_v24 }
 0x666   :  { %v4289_v47 = vpop.eup %4288  ;;  %v2280_v43 = vsub.f32 1.0, %v4287_v26  ;;  %v2284_v51 = vmul.f32 %v4287_v26, %v5204_v56  ;;  %v2645_v56 = vld [vmem:[%s5525_s4 + $0x50] sm:$0xff]  ;;  %v2672_v49 = vld [vmem:[%s5525_s4 + $0x128] sm:$0xff]  ;;  %v2674_v26 = vld [vmem:[%s5525_s4 + $0x138] sm:$0xff] }
 0x667   :  { %v2277_v41 = vadd.f32 %v2273_v8, %v2271_v16  ;;  %4290 = vtanh.f32 %v2276_v31  ;;  %v2281_v17 = vsub.f32 1.0, %v4289_v47  ;;  %v2285_v60 = vmul.f32 %v4289_v47, %v5206_v40  ;;  %v2675_v8 = vld [vmem:[%s5525_s4 + $0x140] sm:$0xff]  ;;  %v2678_v47 = vld [vmem:[%s5525_s4 + $0x158] sm:$0xff] }
 0x668   :  { %v4100_v16 = vpack.c.bf16 %v2668_v23, %v2665_v34  ;;  %v4102_v31 = vpack.c.bf16 %v2675_v8, %v2672_v49 }
 0x669   :  { %4292 = vtanh.f32 %v2277_v41  ;;  %v2671_v41 = vld [vmem:[%s5525_s4 + $0x120] sm:$0xff] }
 0x671   :  { %v4291_v42 = vpop.eup %4290 }
 0x672   :  { %v2282_v45 = vmul.f32 %v4291_v42, %v2280_v43  ;;  %v4104_v43 = vpack.c.bf16 %v2674_v26, %v2671_v41 }
 0x673   :  { %v4293_v22 = vpop.eup %4292 }
 0x674   :  { %v2283_v48 = vmul.f32 %v4293_v22, %v2281_v17  ;;  %v5260_v13 = vadd.f32 %v2284_v51, %v2282_v45  ;;  %v2677_v17 = vld [vmem:[%s5525_s4 + $0x150] sm:$0xff]  ;;  %v2680_v45 = vld [vmem:[%s5525_s4 + $0x168] sm:$0xff] }
 0x675   :  { %v4108_v51 = vpack.c.bf16 %v2680_v45, %v2677_v17 }
 0x676   :  { %v5262_v50 = vadd.f32 %v2285_v60, %v2283_v48  ;;  %2288 = vst [vmem:[#allocation3 + $0x5] sm:$0x1] %v5260_v13 }
 0x678   :  { %2289 = vst [vmem:[#allocation3 + $0xd] sm:$0x1] %v5262_v50  ;;  %v2344_v54 = vcombine.low %v5260_v13, %v5262_v50 }
 0x67a   :  { %v2351_v59 = vrot.slane %v2344_v54, %v4758_v63 }
 0x67c   :  { %v2358_v4 = vrot.slane %v2351_v59, %v4758_v63 }
 0x67e   :  { %2425 = vmatmul.mubr.f32.vlgmr.msra.gmra.mrb[12].mxu0 %v2358_v4  ;;  %3606 = vmatmul.mubr.f32.vlgmr.msra.gmra.mrb[18].mxu1 %v2358_v4 }
 0x67f   :  { %4112 = vmatpush3.bf16.msra.mxu1 %v5072_v61  ;;  %2765 = vmatprep.mubr.f32.mxu0 %v4391_v7  ;;  %v2639_v61 = vld [vmem:[%s5525_s4 + $0x20] sm:$0xff] }
 0x680   :  { %4113 = vmatprep.subr.bf16.mxu1 %v4392_v38  ;;  %3640 = vmatprep.mubr.msk.f32.mxu1 %vm4393_vm1, %v4391_v7  ;;  %v2636_v7 = vld [vmem:[%s5525_s4 + $0x8] sm:$0xff] }
 0x683   :  { %4115 = vmatpush3.bf16.msra.mxu1 %v5082_v5  ;;  %v4078_v5 = vpack.c.bf16 %v2639_v61, %v2636_v7  ;;  %v2291_v7 = vld [vmem:[#allocation4 + $0x6] ss:$8 sm:$0x7] }
 0x684   :  { %4116 = vmatprep.subr.bf16.mxu1 %v4392_v38  ;;  %v2613_v0 = vrot.slane %v2291_v7, 2 }
 0x685   :  { %4079 = vmatprep.subr.bf16.mxu0 %v4078_v5 }
 0x687   :  { %4118 = vmatpush3.bf16.msra.mxu1 %v5092_v20  ;;  %v2635_v20 = vld [vmem:[%s5525_s4] sm:$0xff] }
 0x688   :  { %4119 = vmatprep.subr.bf16.mxu1 %v4392_v38 }
 0x68b   :  { %4121 = vmatpush3.bf16.msra.mxu1 %v5105_v30  ;;  %v2638_v30 = vld [vmem:[%s5525_s4 + $0x18] sm:$0xff] }
 0x68c   :  { %4122 = vmatprep.subr.bf16.mxu1 %v4392_v38 }
 0x68f   :  { %4124 = vmatpush3.bf16.msra.mxu1 %v5111_v3  ;;  %v4080_v3 = vpack.c.bf16 %v2638_v30, %v2635_v20 }
 0x690   :  { %4125 = vmatprep.subr.bf16.mxu1 %v4392_v38 }
 0x691   :  { %4081 = vmatpush1.bf16.msra.mxu0 %v4080_v3  ;;  %v2293_v3 = vld [vmem:[#allocation4 + $0x1e] ss:$8 sm:$0x7] }
 0x692   :  { %v2543_v11 = vrot.slane %v2293_v3, 1 }
 0x693   :  { %4127 = vmatpush3.bf16.msra.mxu1 %v5121_v36  ;;  %v2642_v36 = vld [vmem:[%s5525_s4 + $0x38] sm:$0xff] }
 0x694   :  { %4128 = vmatprep.subr.bf16.mxu1 %v4392_v38  ;;  %v4082_v40 = vpack.c.bf16 %v2645_v56, %v2642_v36 }
 0x696   :  { %4083 = vmatprep.subr.bf16.mxu0 %v4082_v40  ;;  %v2542_v40 = vrot.slane %v2291_v7, 1 }
 0x697   :  { %4085 = vmatpush1.bf16.msra.mxu0 %v4084_v33  ;;  %4130 = vmatpush3.bf16.msra.mxu1 %v4129_v14 }
 0x698   :  { %4087 = vmatprep.subr.bf16.mxu0 %v4086_v18  ;;  %4131 = vmatprep.subr.bf16.mxu1 %v4392_v38  ;;  %v2681_v38 = vld [vmem:[%s5525_s4 + $0x170] sm:$0xff] }
 0x699   :  { %v4106_v42 = vpack.c.bf16 %v2681_v38, %v2678_v47 }
 0x69b   :  { %4089 = vmatpush1.bf16.msra.mxu0 %v4088_v44  ;;  %4133 = vmatpush3.bf16.msra.mxu1 %v4132_v1 }
 0x69c   :  { %4091 = vmatprep.subr.bf16.mxu0 %v4090_v2 }
 0x69f   :  { %4093 = vmatpush1.bf16.msra.mxu0 %v4092_v53 }
 0x6a0   :  { %4095 = vmatprep.subr.bf16.mxu0 %v4094_v55 }
 0x6a3   :  { %4097 = vmatpush1.bf16.msra.mxu0 %v4096_v27  ;;  %v2614_v27 = vrot.slane %v2293_v3, 2 }
 0x6a4   :  { %4099 = vmatprep.subr.bf16.mxu0 %v4098_v32 }
 0x6a7   :  { %4101 = vmatpush1.bf16.msra.mxu0 %v4100_v16 }
 0x6a8   :  { %4103 = vmatprep.subr.bf16.mxu0 %v4102_v31 }
 0x6ab   :  { %4105 = vmatpush1.bf16.msra.mxu0 %v4104_v43 }
 0x6ac   :  { %4107 = vmatprep.subr.bf16.mxu0 %v4106_v42 }
 0x6af   :  { %4109 = vmatpush1.bf16.msra.mxu0 %v4108_v51 }
 0x751   :  { %v2426_v22 = vpop.f32.mrb[12].mxu0  ;;  %v2497_v48 = vpop.f32.mrb[18].mxu1 }
 0x752   :  { %v2508_v60 = vrot.slane %v2426_v22, %v4758_v63  ;;  %v2428_v54 = vpop.f32.mrb[13].mxu0  ;;  %v3607_v59 = vpop.f32.mrb[19].mxu1  ;;  %v2585_v12 = vadd.f32 %v5196_v6, %v2497_v48  ;;  %v2995_v48 = vld [vmem:[%s5527_s6 + $0x10] sm:$0xff] }
 0x753   :  { %v2553_v4 = vrot.slane %v2428_v54, %v4758_v63  ;;  %v2997_v59 = vld [vmem:[%s5527_s6 + $0x20] sm:$0xff] }
 0x754   :  { %v2509_v61 = vcombine.high %v2508_v60, %v2508_v60  ;;  %v2516_v5 = vrot.slane %v2508_v60, %v4758_v63  ;;  %v2593_v37 = vrot.slane %v2585_v12, %v4758_v63  ;;  %v2996_v60 = vld [vmem:[%s5527_s6 + $0x18] sm:$0xff] }
 0x755   :  { %v2554_v20 = vcombine.high %v2553_v4, %v2553_v4  ;;  %v2561_v30 = vrot.slane %v2553_v4, %v4758_v63  ;;  %v4138_v54 = vpack.c.bf16 %v2996_v60, %v2995_v48  ;;  %v2998_v4 = vld [vmem:[%s5527_s6 + $0x28] sm:$0xff] }
 0x756   :  { %v2523_v36 = vrot.slane %v2509_v61, %v4758_v63  ;;  %v2526_v56 = vadd.f32 %v2516_v5, %v2291_v7  ;;  %v2594_v55 = vcombine.high %v2593_v37, %v2593_v37  ;;  %v2601_v29 = vrot.slane %v2593_v37, %v4758_v63  ;;  %v2999_v61 = vld [vmem:[%s5527_s6 + $0x30] sm:$0xff]  ;;  %v3000_v5 = vld [vmem:[%s5527_s6 + $0x38] sm:$0xff] }
 0x757   :  { %v2568_v15 = vrot.slane %v2554_v20, %v4758_v63  ;;  %v2571_v35 = vadd.f32 %v2561_v30, %v2542_v40  ;;  %v4142_v7 = vpack.c.bf16 %v2998_v4, %v2997_v59  ;;  %v4146_v20 = vpack.c.bf16 %v3000_v5, %v2999_v61  ;;  %v3001_v30 = vld [vmem:[%s5527_s6 + $0x40] sm:$0xff]  ;;  %v3004_v40 = vld [vmem:[%s5527_s6 + $0x58] sm:$0xff] }
 0x758   :  { %v2527_v19 = vadd.f32 %v2523_v36, %v2293_v3  ;;  %v3187_v33 = vmul.f32 -1.442695, %v2526_v56  ;;  %v2608_v10 = vrot.slane %v2594_v55, %v4758_v63  ;;  %v3002_v3 = vld [vmem:[%s5527_s6 + $0x48] sm:$0xff]  ;;  %v3003_v56 = vld [vmem:[%s5527_s6 + $0x50] sm:$0xff] }
 0x759   :  { %v2572_v18 = vadd.f32 %v2568_v15, %v2543_v11  ;;  %v3189_v46 = vmul.f32 -1.442695, %v2571_v35  ;;  %v4150_v36 = vpack.c.bf16 %v3002_v3, %v3001_v30  ;;  %v4154_v15 = vpack.c.bf16 %v3004_v40, %v3003_v56  ;;  %v3007_v35 = vld [vmem:[%s5527_s6 + $0x70] sm:$0xff] }
 0x75a   :  { %4294 = vpow2.f32 %v3187_v33  ;;  %v3188_v39 = vmul.f32 -1.442695, %v2527_v19  ;;  %v3005_v19 = vld [vmem:[%s5527_s6 + $0x60] sm:$0xff]  ;;  %v3006_v33 = vld [vmem:[%s5527_s6 + $0x68] sm:$0xff] }
 0x75b   :  { %v3190_v9 = vmul.f32 -1.442695, %v2572_v18  ;;  %v4158_v11 = vpack.c.bf16 %v3006_v33, %v3005_v19 }
 0x75c   :  { %4296 = vpow2.f32 %v3188_v39  ;;  %v3008_v39 = vld [vmem:[%s5527_s6 + $0x78] sm:$0xff] }
 0x75d   :  { %4298 = vpow2.f32 %v3189_v46  ;;  %v4162_v18 = vpack.c.bf16 %v3008_v39, %v3007_v35 }
 0x75e   :  { %4300 = vpow2.f32 %v3190_v9 }
 0x764   :  { %v4295_v58 = vpop.eup %4294 }
 0x765   :  { %v2534_v44 = vadd.f32 1.0, %v4295_v58 }
 0x766   :  { %v4297_v2 = vpop.eup %4296 }
 0x767   :  { %v2535_v25 = vadd.f32 1.0, %v4297_v2  ;;  %4302 = vrcp.f32 %v2534_v44  ;;  %v4299_v28 = vpop.eup %4298 }
 0x768   :  { %v4301_v53 = vpop.eup %4300  ;;  %v2579_v21 = vadd.f32 1.0, %v4299_v28 }
 0x769   :  { %4304 = vrcp.f32 %v2535_v25  ;;  %v2580_v62 = vadd.f32 1.0, %v4301_v53  ;;  %v2632_v25 = vld [vmem:[#allocation4 + $0x7] ss:$8 sm:$0x7] }
 0x76a   :  { %4306 = vrcp.f32 %v2579_v21  ;;  %v2634_v21 = vld [vmem:[#allocation4 + $0x1f] ss:$8 sm:$0x7] }
 0x76b   :  { %4308 = vrcp.f32 %v2580_v62 }
 0x771   :  { %v4303_v52 = vpop.eup %4302 }
 0x772   :  { %v2611_v14 = vmul.f32 %v4303_v52, %v2601_v29  ;;  %v2883_v52 = vrot.slane %v2632_v25, 1 }
 0x773   :  { %v4305_v24 = vpop.eup %4304 }
 0x774   :  { %v2612_v57 = vmul.f32 %v4305_v24, %v2608_v10  ;;  %v2617_v32 = vadd.f32 %v2613_v0, %v2611_v14  ;;  %v4307_v23 = vpop.eup %4306  ;;  %v2884_v24 = vrot.slane %v2634_v21, 1 }
 0x775   :  { %v4309_v1 = vpop.eup %4308  ;;  %v2621_v49 = vsub.f32 1.0, %v4307_v23  ;;  %v2625_v41 = vmul.f32 %v4307_v23, %v5260_v13  ;;  %v2993_v13 = vld [vmem:[%s5527_s6] sm:$0xff] }
 0x776   :  { %v2618_v34 = vadd.f32 %v2614_v27, %v2612_v57  ;;  %4310 = vtanh.f32 %v2617_v32  ;;  %v2622_v16 = vsub.f32 1.0, %v4309_v1  ;;  %v2626_v38 = vmul.f32 %v4309_v1, %v5262_v50  ;;  %v2994_v50 = vld [vmem:[%s5527_s6 + $0x8] sm:$0xff] }
 0x777   :  { %v4134_v22 = vpack.c.bf16 %v2994_v50, %v2993_v13  ;;  %v2954_v50 = vrot.slane %v2632_v25, 2 }
 0x778   :  { %4312 = vtanh.f32 %v2618_v34 }
 0x779   :  { %4135 = vmatprep.subr.bf16.mxu0 %v4134_v22 }
 0x780   :  { %v4311_v8 = vpop.eup %4310 }
 0x781   :  { %v2623_v31 = vmul.f32 %v4311_v8, %v2621_v49 }
 0x782   :  { %v4313_v26 = vpop.eup %4312 }
 0x783   :  { %v2624_v47 = vmul.f32 %v4313_v26, %v2622_v16  ;;  %v5406_v43 = vadd.f32 %v2625_v41, %v2623_v31 }
 0x785   :  { %v5408_v42 = vadd.f32 %v2626_v38, %v2624_v47  ;;  %2629 = vst [vmem:[#allocation3 + $0x6] sm:$0x1] %v5406_v43 }
 0x787   :  { %2630 = vst [vmem:[#allocation3 + $0xe] sm:$0x1] %v5408_v42  ;;  %v2685_v17 = vcombine.low %v5406_v43, %v5408_v42 }
 0x789   :  { %v2692_v45 = vrot.slane %v2685_v17, %v4758_v63 }
 0x78b   :  { %v2699_v51 = vrot.slane %v2692_v45, %v4758_v63 }
 0x78d   :  { %2766 = vmatmul.mubr.f32.vlgmr.msra.gmra.mrb[14].mxu0 %v2699_v51  ;;  %3641 = vmatmul.mubr.f32.vlgmr.msra.gmra.mrb[20].mxu1 %v2699_v51 }
 0x78e   :  { %4137 = vmatpush3.bf16.msra.mxu0 %v4134_v22 }
 0x78f   :  { %4139 = vmatprep.subr.bf16.mxu0 %v4138_v54 }
 0x792   :  { %4141 = vmatpush3.bf16.msra.mxu0 %v4138_v54 }
 0x793   :  { %4143 = vmatprep.subr.bf16.mxu0 %v4142_v7 }
 0x796   :  { %4145 = vmatpush3.bf16.msra.mxu0 %v4142_v7 }
 0x797   :  { %4147 = vmatprep.subr.bf16.mxu0 %v4146_v20 }
 0x79a   :  { %4149 = vmatpush3.bf16.msra.mxu0 %v4146_v20 }
 0x79b   :  { %4151 = vmatprep.subr.bf16.mxu0 %v4150_v36 }
 0x79e   :  { %4153 = vmatpush3.bf16.msra.mxu0 %v4150_v36 }
 0x79f   :  { %4155 = vmatprep.subr.bf16.mxu0 %v4154_v15 }
 0x7a2   :  { %4157 = vmatpush3.bf16.msra.mxu0 %v4154_v15 }
 0x7a3   :  { %4159 = vmatprep.subr.bf16.mxu0 %v4158_v11 }
 0x7a6   :  { %4161 = vmatpush3.bf16.msra.mxu0 %v4158_v11 }
 0x7a7   :  { %4163 = vmatprep.subr.bf16.mxu0 %v4162_v18 }
 0x7aa   :  { %4165 = vmatpush3.bf16.msra.mxu0 %v4162_v18 }
 0x860   :  { %v2767_v46 = vpop.f32.mrb[14].mxu0  ;;  %v2838_v9 = vpop.f32.mrb[20].mxu1 }
 0x861   :  { %v2849_v58 = vrot.slane %v2767_v46, %v4758_v63  ;;  %v2769_v44 = vpop.f32.mrb[15].mxu0  ;;  %v3642_v2 = vpop.f32.mrb[21].mxu1  ;;  %v2926_v16 = vadd.f32 %v5196_v6, %v2838_v9  ;;  %v2955_v6 = vrot.slane %v2634_v21, 2 }
 0x862   :  { %v2894_v12 = vrot.slane %v2769_v44, %v4758_v63 }
 0x863   :  { %v2850_v37 = vcombine.high %v2849_v58, %v2849_v58  ;;  %v2857_v28 = vrot.slane %v2849_v58, %v4758_v63  ;;  %v2934_v41 = vrot.slane %v2926_v16, %v4758_v63 }
 0x864   :  { %v2895_v53 = vcombine.high %v2894_v12, %v2894_v12  ;;  %v2902_v55 = vrot.slane %v2894_v12, %v4758_v63 }
 0x865   :  { %v2864_v29 = vrot.slane %v2850_v37, %v4758_v63  ;;  %v2867_v62 = vadd.f32 %v2857_v28, %v2632_v25  ;;  %v2935_v38 = vcombine.high %v2934_v41, %v2934_v41  ;;  %v2942_v45 = vrot.slane %v2934_v41, %v4758_v63 }
 0x866   :  { %v2909_v0 = vrot.slane %v2895_v53, %v4758_v63  ;;  %v2912_v27 = vadd.f32 %v2902_v55, %v2883_v52 }
 0x867   :  { %v2868_v10 = vadd.f32 %v2864_v29, %v2634_v21  ;;  %v3191_v14 = vmul.f32 -1.442695, %v2867_v62  ;;  %v2949_v22 = vrot.slane %v2935_v38, %v4758_v63 }
 0x868   :  { %v2913_v32 = vadd.f32 %v2909_v0, %v2884_v24  ;;  %v3193_v34 = vmul.f32 -1.442695, %v2912_v27 }
 0x869   :  { %4314 = vpow2.f32 %v3191_v14  ;;  %v3192_v57 = vmul.f32 -1.442695, %v2868_v10 }
 0x86a   :  { %v3194_v23 = vmul.f32 -1.442695, %v2913_v32 }
 0x86b   :  { %4316 = vpow2.f32 %v3192_v57 }
 0x86c   :  { %4318 = vpow2.f32 %v3193_v34 }
 0x86d   :  { %4320 = vpow2.f32 %v3194_v23 }
 0x873   :  { %v4315_v1 = vpop.eup %4314 }
 0x874   :  { %v2875_v49 = vadd.f32 1.0, %v4315_v1 }
 0x875   :  { %v4317_v8 = vpop.eup %4316 }
 0x876   :  { %v2876_v31 = vadd.f32 1.0, %v4317_v8  ;;  %4322 = vrcp.f32 %v2875_v49  ;;  %v4319_v26 = vpop.eup %4318 }
 0x877   :  { %v4321_v47 = vpop.eup %4320  ;;  %v2920_v17 = vadd.f32 1.0, %v4319_v26 }
 0x878   :  { %4324 = vrcp.f32 %v2876_v31  ;;  %v2921_v51 = vadd.f32 1.0, %v4321_v47 }
 0x879   :  { %4326 = vrcp.f32 %v2920_v17 }
 0x87a   :  { %4328 = vrcp.f32 %v2921_v51 }
 0x880   :  { %v4323_v13 = vpop.eup %4322 }
 0x881   :  { %v2952_v48 = vmul.f32 %v4323_v13, %v2942_v45 }
 0x882   :  { %v4325_v60 = vpop.eup %4324 }
 0x883   :  { %v2953_v54 = vmul.f32 %v4325_v60, %v2949_v22  ;;  %v2958_v59 = vadd.f32 %v2954_v50, %v2952_v48  ;;  %v4327_v7 = vpop.eup %4326 }
 0x884   :  { %v4329_v61 = vpop.eup %4328  ;;  %v2962_v5 = vsub.f32 1.0, %v4327_v7  ;;  %v2966_v36 = vmul.f32 %v4327_v7, %v5406_v43  ;;  %v3196_v43 = vld [vmem:[%s5528_s7] ss:$0 sm:$0xff]  ;;  %s4395_s7 = smov [#allocation7]  }
 0x885   :  { %v2959_v4 = vadd.f32 %v2955_v6, %v2953_v54  ;;  %4330 = vtanh.f32 %v2958_v59  ;;  %v2963_v30 = vsub.f32 1.0, %v4329_v61  ;;  %v2967_v15 = vmul.f32 %v4329_v61, %v5408_v42 }
 0x887   :  { %4332 = vtanh.f32 %v2959_v4 }
 0x88f   :  { %v4331_v20 = vpop.eup %4330 }
 0x890   :  { %v2964_v3 = vmul.f32 %v4331_v20, %v2962_v5 }
 0x891   :  { %v4333_v56 = vpop.eup %4332 }
 0x892   :  { %v2965_v40 = vmul.f32 %v4333_v56, %v2963_v30  ;;  %v2968_v19 = vadd.f32 %v2966_v36, %v2964_v3 }
 0x894   :  { %v2969_v33 = vadd.f32 %v2967_v15, %v2965_v40  ;;  %2970 = vst [vmem:[#allocation3 + $0x7] sm:$0x1] %v2968_v19 }
 0x896   :  { %2971 = vst [vmem:[#allocation3 + $0xf] sm:$0x1] %v2969_v33  ;;  %v2974_v11 = vcombine.low %v2968_v19, %v2969_v33 }
 0x898   :  { %v2981_v35 = vrot.slane %v2974_v11, %v4758_v63 }
 0x89a   :  { %3195 = vst.sshfl [vmem:[#allocation2] sm:$0x5 pattern:$0x73625140] %v2981_v35 }
 0x89b   :  { %3197 = vst.sshfl [vmem:[%s5531_s10] sm:$0x5 pattern:$0x73625140] %v2981_v35  ;;  %v2991_v39 = vld [vmem:[#allocation3] sm:$0xff]  ;;  %s3139_s10 = sshll.u32 %s4395_s7, 4  ;;  %s3140_s10 = int_to_ptr.vmem [resolvable:$true] %s3139_s10 }
 0x89c   :  { %3675 = vmatprep.mubr.f32.mxu0 %v2991_v39  ;;  %s4343_s26 = scalar_lea.vmem %s3140_s10, 256  ;;  %p4348_p1 = scmp.lt.s32.totalorder %s3140_s10, %s3140_s10 }
 0x89d   :  { %v2992_v18 = vld [vmem:[#allocation3 + $0x8] sm:$0xff]  ;;  %p4344_p0 = scmp.ne.s32.totalorder %s3140_s10, %s4343_s26  ;;  %p4349_p2 = scmp.lt.s32.totalorder %s4343_s26, %s4343_s26 }
 0x89e   :  { %3676 = vmatmul.mubr.f32.vlgmr.msra.gmra.mrb[16].mxu0 %v2992_v18 }
 0x89f   :  { %p4350_p3 = por %p4349_p2, %p4348_p1 }
 0x8a1   :  { %p4351_p4 = pnand %p4350_p3, %p4344_p0 }
 0x971   :  { %v3677_v42 = vpop.f32.mrb[16].mxu0 }
 0x972   :  { %v3088_v46 = vadd.f32 %v3677_v42, %v3196_v43  ;;  %v3082_v9 = vpop.f32.mrb[17].mxu0 }
 0x973   :  { %v3083_v58 = vadd.f32 %v3196_v43, %v3082_v9 }
 0x974   :  { %3093 = vst.msk [vmem:[#allocation7 + $0x8] sm:$0xff] %vm3091_vm2, %v3088_v46  ;;  %v3097_v44 = vsel %vm3091_vm2, %v3088_v46, -inf }
 0x975   :  { %3092 = vst.msk [vmem:[#allocation7] sm:$0xff] %vm3091_vm2, %v3083_v58  ;;  %v3094_v63 = vsel %vm3091_vm2, %v3083_v58, -inf }
 0x976   :  { %3095 = vmax.xlane.f32.xlu0 %v3094_v63 }
 0x97a   :  { %3098 = vmax.xlane.f32.xlu0 %v3097_v44 }
 0xa03   :  { %v3096_v2 = vpop.xlane.xlu0 %3095 }
 0xa04   :  { %v3100_v12 = vsub.f32 %v3083_v58, %v3096_v2 }
 0xa06   :  { %v3102_v25 = vmul.f32 1.442695, %v3100_v12 }
 0xa07   :  { %v3099_v37 = vpop.xlane.xlu0 %3098 }
 0xa08   :  { %4334 = vpow2.f32 %v3102_v25  ;;  %v3101_v28 = vsub.f32 %v3088_v46, %v3099_v37 }
 0xa0a   :  { %v3104_v53 = vmul.f32 1.442695, %v3101_v28 }
 0xa0c   :  { %4336 = vpow2.f32 %v3104_v53 }
 0xa12   :  { %v4335_v55 = vpop.eup %4334 }
 0xa13   :  { %v3106_v21 = vsel %vm3091_vm2, %v4335_v55, 0.0 }
 0xa14   :  { %3107 = vadd.xlane.f32.xlu1 %v3106_v21 }
 0xa16   :  { %v4337_v29 = vpop.eup %4336 }
 0xa17   :  { %v3109_v62 = vsel %vm3091_vm2, %v4337_v29, 0.0 }
 0xa18   :  { %3110 = vadd.xlane.f32.xlu1 %v3109_v62 }
 0xa19   :  { %4354 = shalt.err (!%p4351_p4)
}
 0xa1a   :  { %s4355_s28 = scalar_lea.hbm %s5530_s9, 256 }
 0xa1b   :  { %p4356_p5 = scmp.ne.s32.totalorder %s5530_s9, %s4355_s28  ;;  %p4359_p6 = scmp.lt.u32.totalorder %s4355_s28, %s5530_s9 }
 0xa1d   :  { %p4361_p7 = pnand %p4359_p6, %p4356_p5 }
 0xa1f   :  { %4364 = shalt.err (!%p4361_p7)
}
 0xa20   :  { %s4396_s13 = smov 128   ;;  %s4397_s14 = smov 8  }
 0xa21   :  { %3145 = dma.vmem_to_hbm [thread:$0]  %s3140_s10, 256, %s5530_s9, [#allocation8], %s4396_s13, %s4396_s13, %s4397_s14  }
 0xa22   :  { %s4398_s17 = smov [#allocation5]  }
 0xa23   :  { %s3127_s18 = sshll.u32 %s4398_s17, 4  ;;  %s3128_s18 = int_to_ptr.vmem [resolvable:$true] %s3127_s18 }
 0xa24   :  { %s4365_s2 = scalar_lea.vmem %s3128_s18, 256  ;;  %p4370_p9 = scmp.lt.s32.totalorder %s3128_s18, %s3128_s18 }
 0xa25   :  { %p4366_p8 = scmp.ne.s32.totalorder %s3128_s18, %s4365_s2  ;;  %p4371_p10 = scmp.lt.s32.totalorder %s4365_s2, %s4365_s2 }
 0xa27   :  { %p4372_p11 = por %p4371_p10, %p4370_p9 }
 0xa29   :  { %p4373_p12 = pnand %p4372_p11, %p4366_p8 }
 0xaa1   :  { %v3108_v52 = vpop.xlane.xlu1 %3107 }
 0xaa2   :  { %4338 = vrcp.f32 %v3108_v52 }
 0xaa5   :  { %v3111_v0 = vpop.xlane.xlu1 %3110 }
 0xaa6   :  { %4340 = vrcp.f32 %v3111_v0 }
 0xaac   :  { %v4339_v10 = vpop.eup %4338 }
 0xaad   :  { %v3114_v14 = vmul.f32 %v4339_v10, %v4335_v55 }
 0xaaf   :  { %3116 = vst.msk [vmem:[#allocation5] sm:$0xff] %vm3091_vm2, %v3114_v14 }
 0xab0   :  { %v4341_v24 = vpop.eup %4340 }
 0xab1   :  { %v3115_v27 = vmul.f32 %v4341_v24, %v4337_v29 }
 0xab3   :  { %3117 = vst.msk [vmem:[#allocation5 + $0x8] sm:$0xff] %vm3091_vm2, %v3115_v27 }
 0xab4   :  { %4376 = shalt.err (!%p4373_p12)
}
 0xab5   :  { %s4377_s3 = scalar_lea.hbm %s5529_s8, 256 }
 0xab6   :  { %p4378_p13 = scmp.ne.s32.totalorder %s5529_s8, %s4377_s3  ;;  %p4381_p0 = scmp.lt.u32.totalorder %s4377_s3, %s5529_s8 }
 0xab8   :  { %p4383_p1 = pnand %p4381_p0, %p4378_p13 }
 0xaba   :  { %4386 = shalt.err (!%p4383_p1)
}
 0xabb   :  { %3133 = dma.vmem_to_hbm [thread:$0]  %s3128_s18, 256, %s5529_s8, [#allocation6], %s4396_s13, %s4396_s13, %s4397_s14  }
 0xabc   :  { %4387 = dma.done.wait [#allocation6], 256  }
 0xabd   :  { %4388 = vsyncadd [#allocation6], 4294967040 }
 0xabe   :  { %4389 = dma.done.wait [#allocation8], 256  }
 0xabf   :  { %4390 = vsyncadd [#allocation8], 4294967040 }
 0xac0   :  { %3156 = vsyncpa [#allocation6], 1 }
 0xac1   :  { %3157 = vsyncpa [#allocation8], 1 }

</bundles_post_ra>
